<compile_context>
chip_gen: v7x
topology: tpu7x:2x2x1
jax: 0.10.0
libtpu: 0.0.40
codegen_flags: <defaults>
</compile_context>

<pallas_src>
import math
from functools import partial

import jax
import jax.numpy as jnp
from jax import lax
from jax.experimental import pallas as pl
from jax.experimental.pallas import tpu as pltpu


def _round_up(x, m):
    return (x + m - 1) // m * m


def _cross_attention_kernel(x_ref, y_ref,
                            wq_ref, bq_ref,
                            wk_ref, bk_ref,
                            wv_ref, bv_ref,
                            wo_ref, bo_ref,
                            o_ref,
                            q_scr, m_scr, l_scr, acc_scr,
                            *, block_sk, sk_valid, mask_keys, mxu_dtype):
    bt, bsq, Din = x_ref.shape
    _, bsk, _ = y_ref.shape
    Dout = wq_ref.shape[1]

    k_idx = pl.program_id(2)

    # -- First Sk step for this (batch, Sq) tile: project q (1/sqrt(Dout) is
    #    pre-folded into wq/bq) and reset the online-softmax state. ----------
    @pl.when(k_idx == 0)
    def _():
        x2 = x_ref[...].reshape(bt * bsq, Din)
        q = jnp.dot(x2, wq_ref[...], preferred_element_type=jnp.float32) + bq_ref[...]
        q_scr[...] = q.reshape(bt, bsq, Dout).astype(mxu_dtype)
        m_scr[...] = jnp.full(m_scr.shape, -jnp.inf, m_scr.dtype)
        l_scr[...] = jnp.zeros(l_scr.shape, l_scr.dtype)
        acc_scr[...] = jnp.zeros(acc_scr.shape, acc_scr.dtype)

    # -- K/V projections for this Sk tile as large-M 2D matmuls. -------------
    y2 = y_ref[...].reshape(bt * bsk, Din)
    k = (jnp.dot(y2, wk_ref[...], preferred_element_type=jnp.float32)
         + bk_ref[...]).reshape(bt, bsk, Dout).astype(mxu_dtype)
    v = (jnp.dot(y2, wv_ref[...], preferred_element_type=jnp.float32)
         + bv_ref[...]).reshape(bt, bsk, Dout).astype(mxu_dtype)

    # -- Scores: contraction on the feature axis (no materialized k.T). ------
    s = lax.dot_general(q_scr[...], k,
                        dimension_numbers=(((2,), (2,)), ((0,), (0,))),
                        preferred_element_type=jnp.float32)        # (bt,bsq,bsk)

    if mask_keys:  # static python bool; only emitted when Sk was padded
        key_pos = k_idx * block_sk + lax.broadcasted_iota(jnp.int32, s.shape, 2)
        s = jnp.where(key_pos < sk_valid, s, -jnp.inf)

    # -- Online-softmax update (f32 statistics). ------------------------------
    m_new = jnp.maximum(m_scr[...], jnp.max(s, axis=-1, keepdims=True))
    alpha = jnp.exp(m_scr[...] - m_new)
    p = jnp.exp(s - m_new)
    l_scr[...] = alpha * l_scr[...] + jnp.sum(p, axis=-1, keepdims=True)
    acc_scr[...] = alpha * acc_scr[...] + lax.dot_general(
        p.astype(mxu_dtype), v,
        dimension_numbers=(((2,), (1,)), ((0,), (0,))),
        preferred_element_type=jnp.float32)
    m_scr[...] = m_new

    # -- Last Sk step: normalize (exact divide) + output projection. ----------
    @pl.when(k_idx == pl.num_programs(2) - 1)
    def _():
        z = acc_scr[...] / l_scr[...]
        z2 = z.reshape(bt * bsq, Dout).astype(mxu_dtype)
        out = jnp.dot(z2, wo_ref[...], preferred_element_type=jnp.float32) + bo_ref[...]
        o_ref[...] = out.reshape(bt, bsq, Dout).astype(o_ref.dtype)


def _pick_block_b(B, block_sq, target_rows):
    """Largest divisor of B with block_b*block_sq ~ target_rows, keeping at
    least 2 steps on the (parallel) batch axis when B > 1 (v7x megacore)."""
    want = max(1, min(B, max(1, target_rows // max(block_sq, 1))))
    if B >= 2:
        want = min(want, max(1, B // 2))
    best = 1
    for d in range(1, want + 1):
        if B % d == 0:
            best = d
    return best


def cross_attention(x, y, params, *, mxu_dtype=jnp.bfloat16,
                    block_b=None, block_sq=None, block_sk=None,
                    target_rows=256):
    """x: (B, Sq, Din), y: (B, Sk, Din) -> (B, Sq, Dout) in x.dtype.

    mxu_dtype: operand dtype for the matmuls (bf16 recommended on v5e/v6e/v7x;
    pass jnp.float32 for an exact path).  target_rows: desired block_b*block_sq
    MXU M-rows (use ~512 on v6e if VMEM allows).
    """
    out_dtype = x.dtype
    B, Sq, Din = x.shape
    By, Sk, Diny = y.shape
    assert By == B and Diny == Din
    Dout = params["wq"].shape[1]
    scale = 1.0 / math.sqrt(Dout)

    # ---- Alignment / padding: lane-dense output, (8,128)-friendly blocks. ---
    Dout_p = _round_up(Dout, 128)

    Sq_p = _round_up(Sq, 8)
    if block_sq is None:
        block_sq = Sq_p if Sq_p <= 256 else 128
    assert block_sq % 8 == 0
    Sq_p = _round_up(Sq_p, block_sq)

    Sk_p = _round_up(Sk, 8)
    if block_sk is None:
        block_sk = Sk_p if Sk_p <= 512 else 512
    assert block_sk % 8 == 0
    Sk_p = _round_up(Sk_p, block_sk)
    mask_keys = (Sk_p != Sk)

    if block_b is None:
        block_b = _pick_block_b(B, block_sq, target_rows)
    assert B % block_b == 0, "block_b must divide the batch size"

    grid = (B // block_b, Sq_p // block_sq, Sk_p // block_sk)

    # ---- Parameter prep (done in the wrapper, outside the kernel hot loop):
    #      bf16 MXU operands, scale folded into the q projection, padding. ----
    def pad2(w, r, c):
        return jnp.pad(w, ((0, r - w.shape[0]), (0, c - w.shape[1])))

    def pad_bias(b):
        return jnp.pad(b.astype(jnp.float32), (0, Dout_p - Dout)).reshape(1, Dout_p)

    wq = pad2(params["wq"].astype(jnp.float32) * scale, Din, Dout_p).astype(mxu_dtype)
    wk = pad2(params["wk"].astype(jnp.float32), Din, Dout_p).astype(mxu_dtype)
    wv = pad2(params["wv"].astype(jnp.float32), Din, Dout_p).astype(mxu_dtype)
    wo = pad2(params["wo"].astype(jnp.float32), Dout_p, Dout_p).astype(mxu_dtype)
    bq = pad_bias(params["bq"] * scale)     # biases stay f32 (added to f32 acc)
    bk = pad_bias(params["bk"])
    bv = pad_bias(params["bv"])
    bo = pad_bias(params["bo"])

    xp = jnp.pad(x, ((0, 0), (0, Sq_p - Sq), (0, 0))).astype(mxu_dtype)
    yp = jnp.pad(y, ((0, 0), (0, Sk_p - Sk), (0, 0))).astype(mxu_dtype)

    # ---- VMEM budget (explicit scoped limit, with headroom). -----------------
    it_a = jnp.dtype(mxu_dtype).itemsize
    it_o = jnp.dtype(out_dtype).itemsize
    vmem_need = (
        2 * block_b * block_sq * Din * it_a                      # x blocks (2x)
        + 2 * block_b * block_sk * Din * it_a                    # y blocks (2x)
        + 2 * block_b * block_sq * Dout_p * it_o                 # out blocks (2x)
        + (3 * Din + Dout_p) * Dout_p * it_a + 4 * Dout_p * 4    # weights/biases (1x)
        + block_b * block_sq * Dout_p * (it_a + 4)               # q_scr + acc_scr
        + 2 * block_b * block_sq * 128 * 4                       # m/l (lane padded)
        + 2 * block_b * block_sk * Dout_p * 4                    # k/v f32 temporaries
        + 3 * block_b * block_sq * block_sk * 4                  # s/p temporaries
    )
    vmem_limit = max(32 << 20, min(int(vmem_need * 1.5) + (2 << 20), 96 << 20))

    flops = 2 * B * (Sq_p * Din * Dout_p + 2 * Sk_p * Din * Dout_p
                     + 2 * Sq_p * Sk_p * Dout_p + Sq_p * Dout_p * Dout_p)
    cost = pl.CostEstimate(
        flops=int(flops),
        transcendentals=int(B * Sq_p * Sk_p),
        bytes_accessed=int(xp.size * it_a + yp.size * it_a
                           + (3 * Din + Dout_p) * Dout_p * it_a + 4 * Dout_p * 4
                           + B * Sq_p * Dout_p * it_o),
    )

    # Constant-index weight/bias blocks: single-buffered (fetched once).
    const_spec = lambda shape: pl.BlockSpec(shape, lambda b, i, k: (0, 0),
                                            pipeline_mode=pl.Buffered(1))

    kernel = partial(_cross_attention_kernel, block_sk=block_sk, sk_valid=Sk,
                     mask_keys=mask_keys, mxu_dtype=mxu_dtype)

    out_p = pl.pallas_call(
        kernel,
        out_shape=jax.ShapeDtypeStruct((B, Sq_p, Dout_p), out_dtype),
        grid_spec=pltpu.PrefetchScalarGridSpec(
            num_scalar_prefetch=0,
            grid=grid,
            in_specs=[
                pl.BlockSpec((block_b, block_sq, Din), lambda b, i, k: (b, i, 0)),  # x
                pl.BlockSpec((block_b, block_sk, Din), lambda b, i, k: (b, k, 0)),  # y
                const_spec((Din, Dout_p)), const_spec((1, Dout_p)),    # Wq, bq
                const_spec((Din, Dout_p)), const_spec((1, Dout_p)),    # Wk, bk
                const_spec((Din, Dout_p)), const_spec((1, Dout_p)),    # Wv, bv
                const_spec((Dout_p, Dout_p)), const_spec((1, Dout_p)),  # Wo, bo
            ],
            out_specs=pl.BlockSpec((block_b, block_sq, Dout_p),
                                   lambda b, i, k: (b, i, 0)),
            scratch_shapes=[
                pltpu.VMEM((block_b, block_sq, Dout_p), mxu_dtype),    # cached q
                pltpu.VMEM((block_b, block_sq, 1), jnp.float32),       # m
                pltpu.VMEM((block_b, block_sq, 1), jnp.float32),       # l
                pltpu.VMEM((block_b, block_sq, Dout_p), jnp.float32),  # acc
            ]),
        compiler_params=pltpu.CompilerParams(
            dimension_semantics=("parallel", "parallel", "arbitrary"),
            vmem_limit_bytes=vmem_limit),
        cost_estimate=cost,
    )(xp, yp, wq, bq, wk, bk, wv, bv, wo, bo)

    return out_p[:, :Sq, :Dout]


def init_params(key, input_dim, output_dim):
    """Synthetic init mimicking nn.Linear defaults; o zeroed as in init_o()."""
    ks = jax.random.split(key, 6)
    bound = 1.0 / math.sqrt(input_dim)
    uni = lambda k, shape: jax.random.uniform(k, shape, jnp.float32, -bound, bound)
    return {
        "wq": uni(ks[0], (input_dim, output_dim)),
        "bq": uni(ks[1], (output_dim,)),
        "wk": uni(ks[2], (input_dim, output_dim)),
        "bk": uni(ks[3], (output_dim,)),
        "wv": uni(ks[4], (input_dim, output_dim)),
        "bv": uni(ks[5], (output_dim,)),
        "wo": jnp.zeros((output_dim, output_dim), jnp.float32),   # init_o(): zeros
        "bo": jnp.zeros((output_dim,), jnp.float32),
    }


def cross_attention_ref(x, y, p):
    """Pure-JAX reference of the PyTorch forward (f32)."""
    q = x @ p["wq"] + p["bq"]
    k = y @ p["wk"] + p["bk"]
    v = y @ p["wv"] + p["bv"]
    s = jnp.einsum("bqd,bkd->bqk", q, k) / math.sqrt(q.shape[-1])
    a = jax.nn.softmax(s, axis=-1)
    z = jnp.einsum("bqk,bkd->bqd", a, v)
    return z @ p["wo"] + p["bo"]


if __name__ == "__main__":
    B, Sq, Sk, Din, Dout = 8, 16, 16, 32, 128
    key = jax.random.PRNGKey(0)
    kx, ky, kp, kw, kb = jax.random.split(key, 5)

    x = jax.random.normal(kx, (B, Sq, Din), jnp.float32)
    y = jax.random.normal(ky, (B, Sk, Din), jnp.float32)
    params = init_params(kp, Din, Dout)

    # 1) Faithful module init (o zero-initialized), exact f32 MXU path.
    out = jax.block_until_ready(cross_attention(x, y, params, mxu_dtype=jnp.float32))
    ref = cross_attention_ref(x, y, params)
    assert out.shape == (B, Sq, Dout)
    assert jnp.allclose(out, ref, atol=1e-5, rtol=1e-5)

    # 2) Non-zero o projection, default bf16 MXU path, ragged shapes that
    #    exercise Sk/Dout padding, key masking and the multi-step online
    #    softmax (block_sk=8 -> 3 Sk tiles, last partially masked).
    Sk2, Dout2 = 20, 96
    y2 = jax.random.normal(ky, (B, Sk2, Din), jnp.float32)
    params2 = init_params(kp, Din, Dout2)
    bound = 1.0 / math.sqrt(Dout2)
    params2 = dict(
        params2,
        wo=jax.random.uniform(kw, (Dout2, Dout2), jnp.float32, -bound, bound),
        bo=jax.random.uniform(kb, (Dout2,), jnp.float32, -bound, bound),
    )
    ref2 = cross_attention_ref(x, y2, params2)
    out2 = jax.block_until_ready(
        cross_attention(x, y2, params2, block_b=2, block_sq=8, block_sk=8))
    assert out2.shape == (B, Sq, Dout2)
    assert jnp.allclose(out2, ref2, atol=1e-1, rtol=1e-1)

    # 3) Same ragged shapes on the exact f32 path (tight check of padding /
    #    masking / online-softmax logic itself).
    out3 = jax.block_until_ready(
        cross_attention(x, y2, params2, mxu_dtype=jnp.float32,
                        block_b=2, block_sq=8, block_sk=8))
    assert jnp.allclose(out3, ref2, atol=1e-4, rtol=1e-4)

    # 4) bf16 activations end-to-end (recommended fast path on v6e/v7x).
    out4 = jax.block_until_ready(
        cross_attention(x.astype(jnp.bfloat16), y2.astype(jnp.bfloat16), params2))
    assert out4.dtype == jnp.bfloat16
    assert jnp.allclose(out4.astype(jnp.float32), ref2, atol=2e-1, rtol=2e-1)

    print("KERNEL_OK")
</pallas_src>

<mosaic_0001>
module attributes {stable_mosaic.version = 11 : i64} {
  func.func @_cross_attention_kernel(%arg0: i32, %arg1: i32, %arg2: i32, %arg3: memref<4x16x32xf32, #tpu.memory_space<vmem>>, %arg4: memref<4x16x32xf32, #tpu.memory_space<vmem>>, %arg5: memref<32x128xf32, #tpu.memory_space<vmem>>, %arg6: memref<1x128xf32, #tpu.memory_space<vmem>>, %arg7: memref<32x128xf32, #tpu.memory_space<vmem>>, %arg8: memref<1x128xf32, #tpu.memory_space<vmem>>, %arg9: memref<32x128xf32, #tpu.memory_space<vmem>>, %arg10: memref<1x128xf32, #tpu.memory_space<vmem>>, %arg11: memref<128x128xf32, #tpu.memory_space<vmem>>, %arg12: memref<1x128xf32, #tpu.memory_space<vmem>>, %arg13: memref<4x16x128xf32, #tpu.memory_space<vmem>>, %arg14: memref<4x16x128xf32, #tpu.memory_space<vmem>>, %arg15: memref<4x16x1xf32, #tpu.memory_space<vmem>>, %arg16: memref<4x16x1xf32, #tpu.memory_space<vmem>>, %arg17: memref<4x16x128xf32, #tpu.memory_space<vmem>>) attributes {dimension_semantics = [#tpu.dimension_semantics<parallel>, #tpu.dimension_semantics<parallel>, #tpu.dimension_semantics<arbitrary>], iteration_bounds = array<i64: 2, 1, 1>, scalar_prefetch = 0 : i64, scratch_operands = 4 : i64, tpu.core_type = #tpu.core_type<tc>, window_params = [{transform_indices = @transform_0, window_bounds = array<i64: 4, 16, 32>}, {transform_indices = @transform_1, window_bounds = array<i64: 4, 16, 32>}, {pipeline_mode = #tpu.pipeline_mode<synchronous>, transform_indices = @transform_2, window_bounds = array<i64: 32, 128>}, {pipeline_mode = #tpu.pipeline_mode<synchronous>, transform_indices = @transform_3, window_bounds = array<i64: 1, 128>}, {pipeline_mode = #tpu.pipeline_mode<synchronous>, transform_indices = @transform_4, window_bounds = array<i64: 32, 128>}, {pipeline_mode = #tpu.pipeline_mode<synchronous>, transform_indices = @transform_5, window_bounds = array<i64: 1, 128>}, {pipeline_mode = #tpu.pipeline_mode<synchronous>, transform_indices = @transform_6, window_bounds = array<i64: 32, 128>}, {pipeline_mode = #tpu.pipeline_mode<synchronous>, transform_indices = @transform_7, window_bounds = array<i64: 1, 128>}, {pipeline_mode = #tpu.pipeline_mode<synchronous>, transform_indices = @transform_8, window_bounds = array<i64: 128, 128>}, {pipeline_mode = #tpu.pipeline_mode<synchronous>, transform_indices = @transform_9, window_bounds = array<i64: 1, 128>}, {transform_indices = @transform_10, window_bounds = array<i64: 4, 16, 128>}]} {
    %c0_i32 = arith.constant 0 : i32
    %0 = arith.cmpi eq, %arg2, %c0_i32 : i32
    %1 = arith.extui %0 : i1 to i32
    %c0_i32_0 = arith.constant 0 : i32
    %2 = arith.cmpi ne, %1, %c0_i32_0 : i32
    scf.if %2 {
      %c0_42 = arith.constant 0 : index
      %c0_43 = arith.constant 0 : index
      %c0_44 = arith.constant 0 : index
      %45 = vector.load %arg3[%c0_42, %c0_43, %c0_44] : memref<4x16x32xf32, #tpu.memory_space<vmem>>, vector<4x16x32xf32>
      %46 = vector.shape_cast %45 : vector<4x16x32xf32> to vector<64x32xf32>
      %c0_45 = arith.constant 0 : index
      %c0_46 = arith.constant 0 : index
      %47 = vector.load %arg5[%c0_45, %c0_46] : memref<32x128xf32, #tpu.memory_space<vmem>>, vector<32x128xf32>
      %cst_47 = arith.constant dense<0.000000e+00> : vector<64x128xf32>
      %48 = tpu.matmul %46, %47, %cst_47 {dimension_numbers = #tpu.dot_dimension_numbers<[1], [0], [0], [1], [0, 0, 1, 1], [], []>} : vector<64x32xf32>, vector<32x128xf32>, vector<64x128xf32> -> vector<64x128xf32>
      %c0_48 = arith.constant 0 : index
      %c0_49 = arith.constant 0 : index
      %49 = vector.load %arg6[%c0_48, %c0_49] : memref<1x128xf32, #tpu.memory_space<vmem>>, vector<1x128xf32>
      %50 = vector.broadcast %49 : vector<1x128xf32> to vector<64x128xf32>
      %51 = arith.addf %48, %50 : vector<64x128xf32>
      %52 = vector.shape_cast %51 : vector<64x128xf32> to vector<4x16x128xf32>
      %c0_50 = arith.constant 0 : index
      %c0_51 = arith.constant 0 : index
      %c0_52 = arith.constant 0 : index
      %53 = vector.load %arg14[%c0_50, %c0_51, %c0_52] : memref<4x16x128xf32, #tpu.memory_space<vmem>>, vector<4x16x128xf32>
      tpu.vector_store %arg14[%c0_50, %c0_51, %c0_52], %52 {strides = array<i32>} : memref<4x16x128xf32, #tpu.memory_space<vmem>>, vector<4x16x128xf32>,
      %cst_53 = arith.constant 0xFF800000 : f32
      %54 = vector.broadcast %cst_53 : f32 to vector<4x16x1xf32>
      %c0_54 = arith.constant 0 : index
      %c0_55 = arith.constant 0 : index
      %c0_56 = arith.constant 0 : index
      %55 = vector.load %arg15[%c0_54, %c0_55, %c0_56] : memref<4x16x1xf32, #tpu.memory_space<vmem>>, vector<4x16x1xf32>
      tpu.vector_store %arg15[%c0_54, %c0_55, %c0_56], %54 {strides = array<i32>} : memref<4x16x1xf32, #tpu.memory_space<vmem>>, vector<4x16x1xf32>,
      %cst_57 = arith.constant 0.000000e+00 : f32
      %56 = vector.broadcast %cst_57 : f32 to vector<4x16x1xf32>
      %c0_58 = arith.constant 0 : index
      %c0_59 = arith.constant 0 : index
      %c0_60 = arith.constant 0 : index
      %57 = vector.load %arg16[%c0_58, %c0_59, %c0_60] : memref<4x16x1xf32, #tpu.memory_space<vmem>>, vector<4x16x1xf32>
      tpu.vector_store %arg16[%c0_58, %c0_59, %c0_60], %56 {strides = array<i32>} : memref<4x16x1xf32, #tpu.memory_space<vmem>>, vector<4x16x1xf32>,
      %cst_61 = arith.constant 0.000000e+00 : f32
      %58 = vector.broadcast %cst_61 : f32 to vector<4x16x128xf32>
      %c0_62 = arith.constant 0 : index
      %c0_63 = arith.constant 0 : index
      %c0_64 = arith.constant 0 : index
      %59 = vector.load %arg17[%c0_62, %c0_63, %c0_64] : memref<4x16x128xf32, #tpu.memory_space<vmem>>, vector<4x16x128xf32>
      tpu.vector_store %arg17[%c0_62, %c0_63, %c0_64], %58 {strides = array<i32>} : memref<4x16x128xf32, #tpu.memory_space<vmem>>, vector<4x16x128xf32>,
    } else {
    }
    %c0 = arith.constant 0 : index
    %c0_1 = arith.constant 0 : index
    %c0_2 = arith.constant 0 : index
    %3 = vector.load %arg4[%c0, %c0_1, %c0_2] : memref<4x16x32xf32, #tpu.memory_space<vmem>>, vector<4x16x32xf32>
    %4 = vector.shape_cast %3 : vector<4x16x32xf32> to vector<64x32xf32>
    %c0_3 = arith.constant 0 : index
    %c0_4 = arith.constant 0 : index
    %5 = vector.load %arg7[%c0_3, %c0_4] : memref<32x128xf32, #tpu.memory_space<vmem>>, vector<32x128xf32>
    %cst = arith.constant dense<0.000000e+00> : vector<64x128xf32>
    %6 = tpu.matmul %4, %5, %cst {dimension_numbers = #tpu.dot_dimension_numbers<[1], [0], [0], [1], [0, 0, 1, 1], [], []>} : vector<64x32xf32>, vector<32x128xf32>, vector<64x128xf32> -> vector<64x128xf32>
    %c0_5 = arith.constant 0 : index
    %c0_6 = arith.constant 0 : index
    %7 = vector.load %arg8[%c0_5, %c0_6] : memref<1x128xf32, #tpu.memory_space<vmem>>, vector<1x128xf32>
    %8 = vector.broadcast %7 : vector<1x128xf32> to vector<64x128xf32>
    %9 = arith.addf %6, %8 : vector<64x128xf32>
    %10 = vector.shape_cast %9 : vector<64x128xf32> to vector<4x16x128xf32>
    %c0_7 = arith.constant 0 : index
    %c0_8 = arith.constant 0 : index
    %11 = vector.load %arg9[%c0_7, %c0_8] : memref<32x128xf32, #tpu.memory_space<vmem>>, vector<32x128xf32>
    %cst_9 = arith.constant dense<0.000000e+00> : vector<64x128xf32>
    %12 = tpu.matmul %4, %11, %cst_9 {dimension_numbers = #tpu.dot_dimension_numbers<[1], [0], [0], [1], [0, 0, 1, 1], [], []>} : vector<64x32xf32>, vector<32x128xf32>, vector<64x128xf32> -> vector<64x128xf32>
    %c0_10 = arith.constant 0 : index
    %c0_11 = arith.constant 0 : index
    %13 = vector.load %arg10[%c0_10, %c0_11] : memref<1x128xf32, #tpu.memory_space<vmem>>, vector<1x128xf32>
    %14 = vector.broadcast %13 : vector<1x128xf32> to vector<64x128xf32>
    %15 = arith.addf %12, %14 : vector<64x128xf32>
    %16 = vector.shape_cast %15 : vector<64x128xf32> to vector<4x16x128xf32>
    %c0_12 = arith.constant 0 : index
    %c0_13 = arith.constant 0 : index
    %c0_14 = arith.constant 0 : index
    %17 = vector.load %arg14[%c0_12, %c0_13, %c0_14] : memref<4x16x128xf32, #tpu.memory_space<vmem>>, vector<4x16x128xf32>
    %cst_15 = arith.constant dense<0.000000e+00> : vector<4x16x16xf32>
    %18 = tpu.matmul %17, %10, %cst_15 {dimension_numbers = #tpu.dot_dimension_numbers<[2], [2], [1], [1], [0, 0, 0, 1, 1, 1], [0], [0]>} : vector<4x16x128xf32>, vector<4x16x128xf32>, vector<4x16x16xf32> -> vector<4x16x16xf32>
    %c0_16 = arith.constant 0 : index
    %c0_17 = arith.constant 0 : index
    %c0_18 = arith.constant 0 : index
    %19 = vector.load %arg15[%c0_16, %c0_17, %c0_18] : memref<4x16x1xf32, #tpu.memory_space<vmem>>, vector<4x16x1xf32>
    %cst_19 = arith.constant dense<0xFF800000> : vector<4x16xf32>
    %20 = vector.multi_reduction <maximumf>, %18, %cst_19 [2] : vector<4x16x16xf32> to vector<4x16xf32>
    %21 = vector.shape_cast %20 : vector<4x16xf32> to vector<4x16x1xf32>
    %22 = arith.maximumf %19, %21 : vector<4x16x1xf32>
    %c0_20 = arith.constant 0 : index
    %c0_21 = arith.constant 0 : index
    %c0_22 = arith.constant 0 : index
    %23 = vector.load %arg15[%c0_20, %c0_21, %c0_22] : memref<4x16x1xf32, #tpu.memory_space<vmem>>, vector<4x16x1xf32>
    %24 = arith.subf %23, %22 : vector<4x16x1xf32>
    %25 = math.exp %24 : vector<4x16x1xf32>
    %26 = vector.broadcast %22 : vector<4x16x1xf32> to vector<4x16x16xf32>
    %27 = arith.subf %18, %26 : vector<4x16x16xf32>
    %28 = math.exp %27 : vector<4x16x16xf32>
    %c0_23 = arith.constant 0 : index
    %c0_24 = arith.constant 0 : index
    %c0_25 = arith.constant 0 : index
    %29 = vector.load %arg16[%c0_23, %c0_24, %c0_25] : memref<4x16x1xf32, #tpu.memory_space<vmem>>, vector<4x16x1xf32>
    %30 = arith.mulf %25, %29 : vector<4x16x1xf32>
    %cst_26 = arith.constant dense<0.000000e+00> : vector<4x16xf32>
    %31 = vector.multi_reduction <add>, %28, %cst_26 [2] : vector<4x16x16xf32> to vector<4x16xf32>
    %32 = vector.shape_cast %31 : vector<4x16xf32> to vector<4x16x1xf32>
    %33 = arith.addf %30, %32 : vector<4x16x1xf32>
    %c0_27 = arith.constant 0 : index
    %c0_28 = arith.constant 0 : index
    %c0_29 = arith.constant 0 : index
    %34 = vector.load %arg16[%c0_27, %c0_28, %c0_29] : memref<4x16x1xf32, #tpu.memory_space<vmem>>, vector<4x16x1xf32>
    tpu.vector_store %arg16[%c0_27, %c0_28, %c0_29], %33 {strides = array<i32>} : memref<4x16x1xf32, #tpu.memory_space<vmem>>, vector<4x16x1xf32>,
    %c0_30 = arith.constant 0 : index
    %c0_31 = arith.constant 0 : index
    %c0_32 = arith.constant 0 : index
    %35 = vector.load %arg17[%c0_30, %c0_31, %c0_32] : memref<4x16x128xf32, #tpu.memory_space<vmem>>, vector<4x16x128xf32>
    %36 = vector.broadcast %25 : vector<4x16x1xf32> to vector<4x16x128xf32>
    %37 = arith.mulf %36, %35 : vector<4x16x128xf32>
    %cst_33 = arith.constant dense<0.000000e+00> : vector<4x16x128xf32>
    %38 = tpu.matmul %28, %16, %cst_33 {dimension_numbers = #tpu.dot_dimension_numbers<[2], [1], [1], [2], [0, 0, 0, 1, 1, 2], [0], [0]>} : vector<4x16x16xf32>, vector<4x16x128xf32>, vector<4x16x128xf32> -> vector<4x16x128xf32>
    %39 = arith.addf %37, %38 : vector<4x16x128xf32>
    %c0_34 = arith.constant 0 : index
    %c0_35 = arith.constant 0 : index
    %c0_36 = arith.constant 0 : index
    %40 = vector.load %arg17[%c0_34, %c0_35, %c0_36] : memref<4x16x128xf32, #tpu.memory_space<vmem>>, vector<4x16x128xf32>
    tpu.vector_store %arg17[%c0_34, %c0_35, %c0_36], %39 {strides = array<i32>} : memref<4x16x128xf32, #tpu.memory_space<vmem>>, vector<4x16x128xf32>,
    %c0_37 = arith.constant 0 : index
    %c0_38 = arith.constant 0 : index
    %c0_39 = arith.constant 0 : index
    %41 = vector.load %arg15[%c0_37, %c0_38, %c0_39] : memref<4x16x1xf32, #tpu.memory_space<vmem>>, vector<4x16x1xf32>
    tpu.vector_store %arg15[%c0_37, %c0_38, %c0_39], %22 {strides = array<i32>} : memref<4x16x1xf32, #tpu.memory_space<vmem>>, vector<4x16x1xf32>,
    %c0_i32_40 = arith.constant 0 : i32
    %42 = arith.cmpi eq, %arg2, %c0_i32_40 : i32
    %43 = arith.extui %42 : i1 to i32
    %c0_i32_41 = arith.constant 0 : i32
    %44 = arith.cmpi ne, %43, %c0_i32_41 : i32
    scf.if %44 {
      %c0_42 = arith.constant 0 : index
      %c0_43 = arith.constant 0 : index
      %c0_44 = arith.constant 0 : index
      %45 = vector.load %arg17[%c0_42, %c0_43, %c0_44] : memref<4x16x128xf32, #tpu.memory_space<vmem>>, vector<4x16x128xf32>
      %c0_45 = arith.constant 0 : index
      %c0_46 = arith.constant 0 : index
      %c0_47 = arith.constant 0 : index
      %46 = vector.load %arg16[%c0_45, %c0_46, %c0_47] : memref<4x16x1xf32, #tpu.memory_space<vmem>>, vector<4x16x1xf32>
      %47 = vector.broadcast %46 : vector<4x16x1xf32> to vector<4x16x128xf32>
      %48 = arith.divf %45, %47 : vector<4x16x128xf32>
      %49 = vector.shape_cast %48 : vector<4x16x128xf32> to vector<64x128xf32>
      %c0_48 = arith.constant 0 : index
      %c0_49 = arith.constant 0 : index
      %50 = vector.load %arg11[%c0_48, %c0_49] : memref<128x128xf32, #tpu.memory_space<vmem>>, vector<128x128xf32>
      %cst_50 = arith.constant dense<0.000000e+00> : vector<64x128xf32>
      %51 = tpu.matmul %49, %50, %cst_50 {dimension_numbers = #tpu.dot_dimension_numbers<[1], [0], [0], [1], [0, 0, 1, 1], [], []>} : vector<64x128xf32>, vector<128x128xf32>, vector<64x128xf32> -> vector<64x128xf32>
      %c0_51 = arith.constant 0 : index
      %c0_52 = arith.constant 0 : index
      %52 = vector.load %arg12[%c0_51, %c0_52] : memref<1x128xf32, #tpu.memory_space<vmem>>, vector<1x128xf32>
      %53 = vector.broadcast %52 : vector<1x128xf32> to vector<64x128xf32>
      %54 = arith.addf %51, %53 : vector<64x128xf32>
      %55 = vector.shape_cast %54 : vector<64x128xf32> to vector<4x16x128xf32>
      %c0_53 = arith.constant 0 : index
      %c0_54 = arith.constant 0 : index
      %c0_55 = arith.constant 0 : index
      %56 = vector.load %arg13[%c0_53, %c0_54, %c0_55] : memref<4x16x128xf32, #tpu.memory_space<vmem>>, vector<4x16x128xf32>
      tpu.vector_store %arg13[%c0_53, %c0_54, %c0_55], %55 {strides = array<i32>} : memref<4x16x128xf32, #tpu.memory_space<vmem>>, vector<4x16x128xf32>,
    } else {
    }
    return
  }
  func.func @transform_0(%arg0: i32, %arg1: i32, %arg2: i32) -> (i32, i32, i32) {
    %c0_i32 = arith.constant 0 : i32
    %c0_i32_0 = arith.constant 0 : i32
    return %arg0, %arg1, %c0_i32 : i32, i32, i32
  }
  func.func @transform_1(%arg0: i32, %arg1: i32, %arg2: i32) -> (i32, i32, i32) {
    %c0_i32 = arith.constant 0 : i32
    %c0_i32_0 = arith.constant 0 : i32
    return %arg0, %arg2, %c0_i32 : i32, i32, i32
  }
  func.func @transform_2(%arg0: i32, %arg1: i32, %arg2: i32) -> (i32, i32) {
    %c0_i32 = arith.constant 0 : i32
    %c0_i32_0 = arith.constant 0 : i32
    %c0_i32_1 = arith.constant 0 : i32
    return %c0_i32, %c0_i32_0 : i32, i32
  }
  func.func @transform_3(%arg0: i32, %arg1: i32, %arg2: i32) -> (i32, i32) {
    %c0_i32 = arith.constant 0 : i32
    %c0_i32_0 = arith.constant 0 : i32
    %c0_i32_1 = arith.constant 0 : i32
    return %c0_i32, %c0_i32_0 : i32, i32
  }
  func.func @transform_4(%arg0: i32, %arg1: i32, %arg2: i32) -> (i32, i32) {
    %c0_i32 = arith.constant 0 : i32
    %c0_i32_0 = arith.constant 0 : i32
    %c0_i32_1 = arith.constant 0 : i32
    return %c0_i32, %c0_i32_0 : i32, i32
  }
  func.func @transform_5(%arg0: i32, %arg1: i32, %arg2: i32) -> (i32, i32) {
    %c0_i32 = arith.constant 0 : i32
    %c0_i32_0 = arith.constant 0 : i32
    %c0_i32_1 = arith.constant 0 : i32
    return %c0_i32, %c0_i32_0 : i32, i32
  }
  func.func @transform_6(%arg0: i32, %arg1: i32, %arg2: i32) -> (i32, i32) {
    %c0_i32 = arith.constant 0 : i32
    %c0_i32_0 = arith.constant 0 : i32
    %c0_i32_1 = arith.constant 0 : i32
    return %c0_i32, %c0_i32_0 : i32, i32
  }
  func.func @transform_7(%arg0: i32, %arg1: i32, %arg2: i32) -> (i32, i32) {
    %c0_i32 = arith.constant 0 : i32
    %c0_i32_0 = arith.constant 0 : i32
    %c0_i32_1 = arith.constant 0 : i32
    return %c0_i32, %c0_i32_0 : i32, i32
  }
  func.func @transform_8(%arg0: i32, %arg1: i32, %arg2: i32) -> (i32, i32) {
    %c0_i32 = arith.constant 0 : i32
    %c0_i32_0 = arith.constant 0 : i32
    %c0_i32_1 = arith.constant 0 : i32
    return %c0_i32, %c0_i32_0 : i32, i32
  }
  func.func @transform_9(%arg0: i32, %arg1: i32, %arg2: i32) -> (i32, i32) {
    %c0_i32 = arith.constant 0 : i32
    %c0_i32_0 = arith.constant 0 : i32
    %c0_i32_1 = arith.constant 0 : i32
    return %c0_i32, %c0_i32_0 : i32, i32
  }
  func.func @transform_10(%arg0: i32, %arg1: i32, %arg2: i32) -> (i32, i32, i32) {
    %c0_i32 = arith.constant 0 : i32
    %c0_i32_0 = arith.constant 0 : i32
    return %arg0, %arg1, %c0_i32 : i32, i32, i32
  }
}

</mosaic_0001>

<bundles_post_ra>
// kernel: tpu_custom_call.1
= control target key start
LH: loop header
LB: loop body
LE: loop exit
PB: predicated region body
PF: predicated region fallthrough
CT: control target
= control target key end

     0   :  { %s3796_s0 = inlined_call_operand.hbm [shape: f32[8,16,32], index: 0, kind: input, shape index: {}]   ;;  %s3797_s1 = inlined_call_operand.hbm [shape: f32[8,16,32], index: 1, kind: input, shape index: {}]   ;;  %s3798_s2 = inlined_call_operand.hbm [shape: f32[32,128], index: 2, kind: input, shape index: {}]   ;;  %s3799_s3 = inlined_call_operand.vmem [shape: f32[1,128], index: 3, kind: input, shape index: {}]   ;;  %s3800_s4 = inlined_call_operand.hbm [shape: f32[32,128], index: 4, kind: input, shape index: {}]   ;;  %s3801_s5 = inlined_call_operand.vmem [shape: f32[1,128], index: 5, kind: input, shape index: {}]   ;;  %s3802_s6 = inlined_call_operand.hbm [shape: f32[32,128], index: 6, kind: input, shape index: {}]   ;;  %s3803_s7 = inlined_call_operand.vmem [shape: f32[1,128], index: 7, kind: input, shape index: {}]   ;;  %s3804_s8 = inlined_call_operand.hbm [shape: f32[128,128], index: 8, kind: input, shape index: {}]   ;;  %s3805_s9 = inlined_call_operand.vmem [shape: f32[1,128], index: 9, kind: input, shape index: {}]   ;;  %s3806_s10 = inlined_call_operand.hbm [shape: f32[8,16,128], index: 10, kind: output, shape index: {}]  }
   0x1   :  { %3817 = sst [smem:[#allocation27_spill]] %s3796_s0 }
   0x2   :  { %3818 = sst [smem:[#allocation28_spill]] %s3798_s2 }
   0x3   :  { %3819 = sst [smem:[#allocation29_spill]] %s3800_s4 }
   0x4   :  { %3820 = sst [smem:[#allocation30_spill]] %s3801_s5 }
   0x5   :  { %3821 = sst [smem:[#allocation31_spill]] %s3802_s6 }
   0x6   :  { %3822 = sst [smem:[#allocation32_spill]] %s3804_s8 }
   0x7   :  { %3823 = sst [smem:[#allocation33_spill]] %s3805_s9 }
   0x8   :  { %3824 = sst [smem:[#allocation34_spill]] %s3806_s10 }
   0x9   :  { %15 = vsyncpa [#allocation7], 0 }
   0xa   :  { %17 = vsyncpa [#allocation7 + $0x1], 0 }
   0xb   :  { %18 = vsyncpa [#allocation10], 0 }
   0xc   :  { %20 = vsyncpa [#allocation10 + $0x1], 0 }
   0xd   :  { %21 = vsyncpa [#allocation13], 0 }
   0xe   :  { %22 = vsyncpa [#allocation16], 0 }
   0xf   :  { %23 = vsyncpa [#allocation8], 0 }
  0x10   :  { %25 = vsyncpa [#allocation8 + $0x1], 0  ;;  %s3166_s13 = smov 0   ;;  %s3168_s14 = smov 0  }
  0x11   :  { %s3170_s15 = smov 0   ;;  %s3172_s16 = smov 0  }
  0x12   :  { %s3174_s17 = smov 0   ;;  %s3176_s18 = smov 0  }
  0x13 LB: > { %3825 = sst [smem:[#allocation24_spill]] %s3075_s13  ;;  %s3197_s19 = sadd.s32 4294967295, %s3095_s18   ;;  %s3095_s18 = sphi %s3176_s18, %s31_s18   ;;  %s3091_s17 = sphi %s3174_s17, %s3864_s17   ;;  %s3087_s16 = sphi %s3172_s16, %s3863_s16   ;;  %s3083_s15 = sphi %s3170_s15, %s3862_s15   ;;  %s3079_s14 = sphi %s3168_s14, %s3861_s14   ;;  %s3075_s13 = sphi %s3166_s13, %s3860_s13  }
  0x14   : > { %3826 = sst [smem:[#allocation25_spill]] %s3087_s16  ;;  %s2245_s20 = sadd.s32 4294967294, %s3095_s18  }
  0x15   : > { %p72_p0 = scmp.ne.s32.totalorder %s3079_s14, %s3075_s13  ;;  %p3809_p1 = scmp.eq.s32.totalorder %s3197_s19, 0 }
  0x16   : > { %p300_p3 = scmp.eq.s32.totalorder %s2245_s20, 1  ;;  %p2246_p5 = scmp.ge.s32.totalorder %s3095_s18, 1 }
  0x17   : > { %p3206_p4 = por %p3809_p1, %p72_p0  ;;  %p307_p7 = scmp.lt.s32.totalorder %s3095_s18, 3 }
  0x18   : > { %p3211_p6 = por %p300_p3, %p72_p0  ;;  %s3097_s24 = smov [#allocation11]  }
  0x19   : > { %s3827_s21 = scalar_select %p3206_p4, 1, 0 }
  0x1a   : > { %s3828_s22 = scalar_select %p3211_p6, 1, 0 }
  0x1b   : > { %p3216_p8 = pnand %p2246_p5, %p307_p7  ;;  %s319_s25 = sshll.u32 %s3097_s24, 4  ;;  %s3220_s25 = int_to_ptr.vmem [resolvable:$true] %s319_s25 }
  0x1c   : > { %3829 = sst [smem:[#allocation26_spill]] %s3828_s22  ;;  %s3098_s27 = smov [#allocation12]  }
  0x1d   : > { %s3830_s23 = scalar_select %p3216_p8, 1, 0 }
  0x1e   : > { %p2682_p9 = pneg %p3216_p8  ;;  %s335_s28 = sshll.u32 %s3098_s27, 4  ;;  %s3231_s28 = int_to_ptr.vmem [resolvable:$true] %s335_s28 }
  0x1f   : > { %s3099_s29 = smov [#allocation14]   ;;  %s3832_s2 = sld [smem:[#allocation28_spill]] }
  0x20   : > { %p3227_p11 = pnand %p2682_p9, %p3809_p1  ;;  %s3233_s30 = sshll.u32 %s3099_s29, 4  ;;  %s352_s30 = int_to_ptr.vmem [resolvable:$true] %s3233_s30 }
  0x22   : > { %p3243_p13 = pneg %p3227_p11 }
  0x25   : > { %s2825_s20 = scalar_lea.hbm %s3832_s2, 512 }
  0x26   : > { %p2826_p12 = scmp.ne.s32.totalorder %s3832_s2, %s2825_s20  ;;  %p2832_p5 = scmp.lt.u32.totalorder %s2825_s20, %s3832_s2 }
  0x28   : > { %p2828_p0 = pnand %p3243_p13, %p2826_p12 }
  0x2a   : > { %p2829_p3 = pneg %p2828_p0 }
  0x2c   : > { %p2834_p7 = pnand %p2832_p5, %p2829_p3 }
  0x2e   : > { %2837 = shalt.err (!%p2834_p7)
}
  0x2f   : > { %s2838_s22 = scalar_lea.vmem %s3220_s25, 512  ;;  %p2846_p2 = scmp.lt.s32.totalorder %s3220_s25, %s3220_s25 }
  0x30   : > { %p2839_p9 = scmp.ne.s32.totalorder %s3220_s25, %s2838_s22  ;;  %p2847_p6 = scmp.lt.s32.totalorder %s2838_s22, %s2838_s22 }
  0x32   : > { %p2841_p10 = pnand %p2839_p9, %p3243_p13  ;;  %p2848_p12 = por %p2847_p6, %p2846_p2 }
  0x34   : > { %p2842_p1 = pneg %p2841_p10 }
  0x36   : > { %p2849_p0 = pnand %p2848_p12, %p2842_p1 }
  0x38   : > { %2852 = shalt.err (!%p2849_p0)
}
  0x39   : > { %s3813_s11 = smov 128   ;;  %s3815_s12 = smov 8  }
  0x3a   : > { %2685 = dma.hbm_to_vmem [thread:$0]  (!%p3227_p11), %s3832_s2, 512, %s3220_s25, [#allocation10], %s3813_s11, %s3813_s11, %s3815_s12  }
  0x3b   : > { %s3834_s4 = sld [smem:[#allocation29_spill]] }
  0x41   : > { %s2853_s22 = scalar_lea.hbm %s3834_s4, 512 }
  0x42   : > { %p2854_p1 = scmp.ne.s32.totalorder %s3834_s4, %s2853_s22  ;;  %p2860_p10 = scmp.lt.u32.totalorder %s2853_s22, %s3834_s4 }
  0x44   : > { %p2856_p2 = pnand %p2854_p1, %p3243_p13 }
  0x46   : > { %p2857_p6 = pneg %p2856_p2 }
  0x48   : > { %p2862_p3 = pnand %p2860_p10, %p2857_p6 }
  0x4a   : > { %2865 = shalt.err (!%p2862_p3)
}
  0x4b   : > { %s2866_s25 = scalar_lea.vmem %s3231_s28, 512  ;;  %p2874_p12 = scmp.lt.s32.totalorder %s3231_s28, %s3231_s28 }
  0x4c   : > { %p2867_p5 = scmp.ne.s32.totalorder %s3231_s28, %s2866_s25  ;;  %p2875_p0 = scmp.lt.s32.totalorder %s2866_s25, %s2866_s25 }
  0x4e   : > { %p2869_p7 = pnand %p2867_p5, %p3243_p13  ;;  %p2876_p1 = por %p2875_p0, %p2874_p12 }
  0x50   : > { %p2870_p9 = pneg %p2869_p7 }
  0x52   : > { %p2877_p2 = pnand %p2876_p1, %p2870_p9 }
  0x54   : > { %2880 = shalt.err (!%p2877_p2)
}
  0x55   : > { %2688 = dma.hbm_to_vmem [thread:$0]  (!%p3227_p11), %s3834_s4, 512, %s3231_s28, [#allocation13], %s3813_s11, %s3813_s11, %s3815_s12  }
  0x56   : > { %s3835_s6 = sld [smem:[#allocation31_spill]] }
  0x5c   : > { %s2881_s20 = scalar_lea.hbm %s3835_s6, 512 }
  0x5d   : > { %p2882_p6 = scmp.ne.s32.totalorder %s3835_s6, %s2881_s20  ;;  %p2888_p5 = scmp.lt.u32.totalorder %s2881_s20, %s3835_s6 }
  0x5f   : > { %p2884_p10 = pnand %p2882_p6, %p3243_p13 }
  0x61   : > { %p2885_p3 = pneg %p2884_p10 }
  0x63   : > { %p2890_p7 = pnand %p2888_p5, %p2885_p3 }
  0x65   : > { %2893 = shalt.err (!%p2890_p7)
}
  0x66   : > { %s2894_s25 = scalar_lea.vmem %s352_s30, 512  ;;  %p2902_p1 = scmp.lt.s32.totalorder %s352_s30, %s352_s30 }
  0x67   : > { %p2895_p9 = scmp.ne.s32.totalorder %s352_s30, %s2894_s25  ;;  %p2903_p2 = scmp.lt.s32.totalorder %s2894_s25, %s2894_s25 }
  0x69   : > { %p2897_p12 = pnand %p2895_p9, %p3243_p13  ;;  %p2904_p4 = por %p2903_p2, %p2902_p1 }
  0x6b   : > { %p2898_p0 = pneg %p2897_p12 }
  0x6d   : > { %p2905_p8 = pnand %p2904_p4, %p2898_p0 }
  0x6f   : > { %2908 = shalt.err (!%p2905_p8)
}
  0x70   : > { %2691 = dma.hbm_to_vmem [thread:$0]  (!%p3227_p11), %s3835_s6, 512, %s352_s30, [#allocation13], %s3813_s11, %s3813_s11, %s3815_s12  }
  0x71   : > { %s3102_s9 = smov [#allocation15]   ;;  %s3836_s8 = sld [smem:[#allocation32_spill]] }
  0x72   : > { %s367_s10 = sshll.u32 %s3102_s9, 4  ;;  %s368_s10 = int_to_ptr.vmem [resolvable:$true] %s367_s10 }
  0x77   : > { %s2909_s24 = scalar_lea.hbm %s3836_s8, 2048 }
  0x78   : > { %p2910_p4 = scmp.ne.s32.totalorder %s3836_s8, %s2909_s24  ;;  %p2916_p10 = scmp.lt.u32.totalorder %s2909_s24, %s3836_s8 }
  0x7a   : > { %p2912_p8 = pnand %p2910_p4, %p3243_p13 }
  0x7c   : > { %p2913_p6 = pneg %p2912_p8 }
  0x7e   : > { %p2918_p3 = pnand %p2916_p10, %p2913_p6 }
  0x80   : > { %2921 = shalt.err (!%p2918_p3)
}
  0x81   : > { %s2922_s30 = scalar_lea.vmem %s368_s10, 2048  ;;  %p2930_p12 = scmp.lt.s32.totalorder %s368_s10, %s368_s10 }
  0x82   : > { %p2923_p5 = scmp.ne.s32.totalorder %s368_s10, %s2922_s30  ;;  %p2931_p0 = scmp.lt.s32.totalorder %s2922_s30, %s2922_s30 }
  0x84   : > { %p2925_p7 = pnand %p2923_p5, %p3243_p13  ;;  %p2932_p1 = por %p2931_p0, %p2930_p12 }
  0x86   : > { %p2926_p9 = pneg %p2925_p7 }
  0x88   : > { %p2933_p2 = pnand %p2932_p1, %p2926_p9 }
  0x8a   : > { %2936 = shalt.err (!%p2933_p2)
}
  0x8b   : > { %2694 = dma.hbm_to_vmem [thread:$0]  (!%p3227_p11), %s3836_s8, 2048, %s368_s10, [#allocation16], %s3813_s11, %s3813_s11, %s3815_s12  }
  0x8c   : > { %s50_s13 = sadd.s32 1, %s3091_s17  ;;  %s59_s26 = sadd.s32 1, %s3083_s15 }
  0x8d   : > { %p52_p13 = scmp.ge.s32.totalorder %s50_s13, 2  ;;  %p66_p4 = scmp.ne.s32.totalorder %s3083_s15, %s3079_s14 }
  0x8e   : > { %p67_p8 = scmp.eq.s32.totalorder %s3095_s18, 0  ;;  %p2710_p6 = scmp.lt.s32.totalorder %s3095_s18, 2 }
  0x8f   : > { %s3866_s13 = smov (%p52_p13, %s50_s13), 0  ;;  %p3837_p3 = scmp.eq.s32.totalorder %s3197_s19, 1 }
  0x90   : > { %p68_p10 = por %p67_p8, %p66_p4  ;;  %s54_s16 = ssub.s32 %s3091_s17, %s3866_s13 }
  0x91   : > { %p3346_p5 = por %p3837_p3, %p66_p4  ;;  %s384_s20 = sand.u32 1, %s3083_s15  }
  0x92   : > { %p57_p7 = scmp.eq.s32.totalorder %s54_s16, 0  ;;  %s3353_s10 = sshll.u32 %s384_s20, 6 }
  0x93   : > { %s2311_s24 = sshll.u32 %s3091_s17, 10  ;;  %s3839_s0 = sld [smem:[#allocation27_spill]] }
  0x94   : > { %s3357_s27 = scalar_select %p57_p7, %s3083_s15, %s59_s26  }
  0x95   : > { %s388_s30 = scalar_lea.vmem [#allocation6], %s3353_s10  ;;  %p3367_p11 = pnand %p2710_p6, %p68_p10 }
  0x96   : > { %s398_s28 = sshll.u32 %s388_s30, 4  ;;  %s3376_s29 = scalar_lea.hbm %s3797_s1, %s2311_s24  ;;  %s3371_s28 = int_to_ptr.vmem [resolvable:$true] %s398_s28 }
  0x97   : > { %s3378_s22 = scalar_lea.sflag [#allocation7], %s384_s20  ;;  %p2939_p12 = pneg %p3367_p11 }
  0x99   : > { %s3362_s25 = scalar_lea.hbm %s3839_s0, %s2311_s24  ;;  %s2942_s2 = scalar_lea.hbm %s3839_s0, 2048 }
  0x9a   : > { %s2937_s11 = scalar_lea.hbm %s3362_s25, 1024  ;;  %p2943_p2 = scmp.lt.u32.totalorder %s3362_s25, %s3839_s0 }
  0x9b   : > { %p2938_p9 = scmp.ne.s32.totalorder %s3362_s25, %s2937_s11  ;;  %p2944_p13 = scmp.lt.u32.totalorder %s2942_s2, %s2937_s11 }
  0x9c   : > { %p2946_p8 = scmp.lt.u32.totalorder %s2937_s11, %s3362_s25 }
  0x9d   : > { %p2940_p0 = pnand %p2939_p12, %p2938_p9  ;;  %p2945_p4 = por %p2944_p13, %p2943_p2 }
  0x9f   : > { %p2941_p1 = pneg %p2940_p0  ;;  %p2947_p6 = por %p2946_p8, %p2945_p4 }
  0xa1   : > { %p2948_p10 = pnand %p2947_p6, %p2941_p1 }
  0xa3   : > { %2951 = shalt.err (!%p2948_p10)
}
  0xa4   : > { %s2952_s20 = scalar_lea.vmem %s3371_s28, 1024  ;;  %s3103_s12 = smov [#allocation6]  }
  0xa5   : > { %p2953_p3 = scmp.ne.s32.totalorder %s3371_s28, %s2952_s20  ;;  %s2957_s24 = sshll.u32 %s3103_s12, 4  ;;  %s2958_s24 = int_to_ptr.vmem [resolvable:$false] %s2957_s24 }
  0xa6   : > { %s2959_s4 = scalar_lea.vmem %s2958_s24, 2048  ;;  %p2960_p0 = scmp.lt.s32.totalorder %s3371_s28, %s2958_s24 }
  0xa7   : > { %p2955_p7 = pnand %p2953_p3, %p2939_p12  ;;  %p2961_p2 = scmp.lt.s32.totalorder %s2959_s4, %s2952_s20 }
  0xa9   : > { %p2956_p9 = pneg %p2955_p7  ;;  %p2962_p13 = por %p2961_p2, %p2960_p0 }
  0xab   : > { %p2963_p4 = pnand %p2962_p13, %p2956_p9 }
  0xad   : > { %2966 = shalt.err (!%p2963_p4)
}
  0xae   : > { %s3841_s2 = smov 8   ;;  %s3842_s6 = smov 128  }
  0xaf   : > { %2698 = dma.hbm_to_vmem [thread:$0]  (!%p3367_p11), %s3362_s25, 1024, %s3371_s28, %s3378_s22, %s3842_s6, %s3842_s6, %s3841_s2  }
  0xb0   : > { %s412_s11 = scalar_lea.vmem [#allocation9], %s3353_s10  ;;  %s408_s16 = sand.u32 1, %s3095_s18  }
  0xb1   : > { %s422_s26 = sshll.u32 %s412_s11, 4  ;;  %s3413_s30 = scalar_lea.sflag [#allocation10], %s408_s16  ;;  %s3411_s26 = int_to_ptr.vmem [resolvable:$true] %s422_s26 }
  0xb2   : > { %s2967_s20 = scalar_lea.hbm %s3376_s29, 1024  ;;  %s2972_s4 = scalar_lea.hbm %s3797_s1, 2048 }
  0xb3   : > { %p2968_p1 = scmp.ne.s32.totalorder %s3376_s29, %s2967_s20  ;;  %p2973_p10 = scmp.lt.u32.totalorder %s3376_s29, %s3797_s1 }
  0xb4   : > { %p2974_p3 = scmp.lt.u32.totalorder %s2972_s4, %s2967_s20  ;;  %p2976_p9 = scmp.lt.u32.totalorder %s2967_s20, %s3376_s29 }
  0xb5   : > { %p2970_p8 = pnand %p2968_p1, %p2939_p12 }
  0xb6   : > { %p2975_p7 = por %p2974_p3, %p2973_p10 }
  0xb7   : > { %p2971_p6 = pneg %p2970_p8 }
  0xb8   : > { %p2977_p0 = por %p2976_p9, %p2975_p7 }
  0xba   : > { %p2978_p2 = pnand %p2977_p0, %p2971_p6 }
  0xbc   : > { %2981 = shalt.err (!%p2978_p2)
}
  0xbd   : > { %s2982_s10 = scalar_lea.vmem %s3411_s26, 1024  ;;  %s3104_s25 = smov [#allocation9]  }
  0xbe   : > { %p2983_p13 = scmp.ne.s32.totalorder %s3411_s26, %s2982_s10  ;;  %s2987_s28 = sshll.u32 %s3104_s25, 4  ;;  %s2988_s28 = int_to_ptr.vmem [resolvable:$false] %s2987_s28 }
  0xbf   : > { %s2989_s0 = scalar_lea.vmem %s2988_s28, 2048  ;;  %p2990_p8 = scmp.lt.s32.totalorder %s3411_s26, %s2988_s28 }
  0xc0   : > { %p2985_p4 = pnand %p2983_p13, %p2939_p12  ;;  %p2991_p10 = scmp.lt.s32.totalorder %s2989_s0, %s2982_s10 }
  0xc2   : > { %p2986_p1 = pneg %p2985_p4  ;;  %p2992_p3 = por %p2991_p10, %p2990_p8 }
  0xc4   : > { %p2993_p7 = pnand %p2992_p3, %p2986_p1 }
  0xc6   : > { %2996 = shalt.err (!%p2993_p7)
}
  0xc7   : > { %2701 = dma.hbm_to_vmem [thread:$0]  (!%p3367_p11), %s3376_s29, 1024, %s3411_s26, %s3413_s30, %s3842_s6, %s3842_s6, %s3841_s2  }
  0xc8   : > { %p3843_p12 = scmp.ne.s32.totalorder %s3830_s23, 0 }
  0xc9   : > { %s3445_s8 = sand.u32 (!%p3843_p12), 1, %s3079_s14   ;;  %p3844_p6 = scmp.ne.s32.totalorder (!%p3843_p12), %s3827_s21, 0 }
  0xca   : > { %434 = sbr.rel (%p3843_p12) target bundleno = 1533 (0x5fd), region = 60  ;;  %s3448_s22 = sshll.u32 (!%p3843_p12), %s3445_s8, 6 }
  0xcb   : > { %s437_s5 = scalar_lea.sflag (!%p3843_p12), [#allocation7], %s3445_s8  ;;  %s3452_s11 = scalar_lea.vmem (!%p3843_p12), [#allocation6], %s3448_s22 }
  0xd1   : > { %3050 = dma.done.wait (%p3844_p6), %s437_s5, 1024  }
  0xd2   : > { %3052 = vsyncadd (%p3844_p6), %s437_s5, 4294966272  ;;  %s445_s23 = sand.u32 1, %s3197_s19   ;;  %s3460_s2 = scalar_lea.vmem [#allocation9], %s3448_s22 }
  0xd3   : > { %s446_s29 = scalar_lea.sflag [#allocation10], %s445_s23 }
  0xd4   : > { %3054 = dma.done.wait (%p3844_p6), %s446_s29, 1024  }
  0xd5   : > { %3056 = vsyncadd (%p3844_p6), %s446_s29, 4294966272  ;;  %p3845_p11 = scmp.eq.s32.totalorder %s3197_s19, 0 }
  0xd7   : > { %3058 = dma.done.wait (%p3845_p11), [#allocation10], 512   ;;  %p3846_p9 = pmov %p3845_p11 }
  0xd9   : > { %3060 = vsyncadd (%p3846_p9), [#allocation10], 4294966784  ;;  %p3847_p0 = pmov %p3846_p9 }
  0xdb   : > { %3062 = dma.done.wait (%p3847_p0), [#allocation13], 1024   ;;  %p3848_p2 = pmov %p3847_p0 }
  0xdc   : > { %p3849_p13 = pmov %p3847_p0 }
  0xdd   : > { %3064 = vsyncadd (%p3848_p2), [#allocation13], 4294966272 }
  0xde   : > { %3066 = dma.done.wait (%p3849_p13), [#allocation16], 2048   ;;  %p3850_p4 = pmov %p3847_p0 }
  0xdf   : > { %vm536_vm0 = vcmask 261120   ;;  %v525_v0 = vld [vmem:[#allocation11] sm:$0xff]  ;;  %v526_v1 = vld [vmem:[#allocation11 + $0x8] sm:$0xff]  ;;  %v527_v2 = vld [vmem:[#allocation11 + $0x10] sm:$0xff]  ;;  %s3851_s20 = sld [smem:[#allocation30_spill]]  ;;  %vm674_vm1 = vcmask 7168  }
  0xe0   : > { %3068 = vsyncadd (%p3850_p4), [#allocation16], 4294965248  ;;  %v2568_v3 = vpack.c.bf16 %v526_v1, %v525_v0  ;;  %v528_v4 = vld [vmem:[#allocation11 + $0x18] sm:$0xff]  ;;  %v517_v5 = vld [vmem:[%s3452_s11] sm:$0xff]  ;;  %vm1280_vm2 = vcmask 130048   ;;  %s3852_s4 = sld [smem:[#allocation33_spill]] }
  0xe1   : > { %v2572_v6 = vpack.c.bf16 %v528_v4, %v527_v2  ;;  %2416 = vmatprep.mubr.msk.f32.mxu1 %vm536_vm0, %v517_v5  ;;  %v707_v7 = vld [vmem:[#allocation12] sm:$0xff]  ;;  %v708_v8 = vld [vmem:[#allocation12 + $0x8] sm:$0xff]  ;;  %v709_v11 = vld [vmem:[#allocation12 + $0x10] sm:$0xff]  ;;  %s3853_s10 = sld [smem:[#allocation25_spill]]  ;;  %s506_s25 = scalar_lea.vmem [#allocation17], %s3448_s22 }
  0xe2   : > { %2569 = vmatprep.subr.bf16.mxu1 %v2568_v3  ;;  %v2576_v9 = vpack.c.bf16 %v708_v8, %v707_v7  ;;  %v699_v10 = vld [vmem:[%s3460_s2] sm:$0xff]  ;;  %v710_v12 = vld [vmem:[#allocation12 + $0x18] sm:$0xff]  ;;  %v518_v13 = vld [vmem:[%s3452_s11 + $0x8] sm:$0xff]  ;;  %s2090_s28 = sshll.u32 %s506_s25, 4  ;;  %s2074_s29 = scalar_lea.sflag [#allocation8], %s3445_s8  ;;  %s3742_s28 = int_to_ptr.vmem [resolvable:$true] %s2090_s28 }
  0xe3   : > { %2571 = vmatpush3.bf16.msra.mxu1 %v2568_v3  ;;  %2456 = vmatprep.mubr.msk.f32.mxu0 %vm536_vm0, %v699_v10  ;;  %v848_v14 = vld [vmem:[#allocation14] sm:$0xff]  ;;  %v849_v15 = vld [vmem:[#allocation14 + $0x8] sm:$0xff]  ;;  %v519_v16 = vld [vmem:[%s3452_s11 + $0x10] sm:$0xff]  ;;  %v2580_v17 = vpack.c.bf16 %v710_v12, %v709_v11  ;;  %s3108_s19 = smov [#allocation17]  }
  0xe4   : > { %2573 = vmatprep.subr.bf16.mxu1 %v2572_v6  ;;  %v2584_v18 = vpack.c.bf16 %v849_v15, %v848_v14  ;;  %v850_v19 = vld [vmem:[#allocation14 + $0x10] sm:$0xff]  ;;  %v851_v20 = vld [vmem:[#allocation14 + $0x18] sm:$0xff]  ;;  %v521_v23 = vld [vmem:[%s3452_s11 + $0x20] sm:$0xff]  ;;  %s3001_s21 = sshll.u32 %s3108_s19, 4  ;;  %s3002_s21 = int_to_ptr.vmem [resolvable:$false] %s3001_s21 }
  0xe5   : > { %v520_v21 = vld [vmem:[%s3452_s11 + $0x18] sm:$0xff]  ;;  %v2588_v22 = vpack.c.bf16 %v851_v20, %v850_v19  ;;  %v522_v24 = vld [vmem:[%s3452_s11 + $0x28] sm:$0xff]  ;;  %v523_v25 = vld [vmem:[%s3452_s11 + $0x30] sm:$0xff]  ;;  %s3003_s6 = scalar_lea.vmem %s3002_s21, 2048  ;;  %p3004_p3 = scmp.lt.s32.totalorder %s3742_s28, %s3002_s21 }
  0xe6   : > { %2585 = vmatprep.subr.bf16.mxu0 %v2584_v18  ;;  %v700_v26 = vld [vmem:[%s3460_s2 + $0x8] sm:$0xff]  ;;  %v524_v27 = vld [vmem:[%s3452_s11 + $0x38] sm:$0xff]  ;;  %v701_v28 = vld [vmem:[%s3460_s2 + $0x10] sm:$0xff]  ;;  %s3854_s11 = sld [smem:[#allocation34_spill]] }
  0xe7   : > { %2575 = vmatpush3.bf16.msra.mxu1 %v2572_v6  ;;  %2587 = vmatpush3.bf16.msra.mxu0 %v2584_v18  ;;  %v702_v29 = vld [vmem:[%s3460_s2 + $0x18] sm:$0xff]  ;;  %v703_v30 = vld [vmem:[%s3460_s2 + $0x20] sm:$0xff]  ;;  %v704_v31 = vld [vmem:[%s3460_s2 + $0x28] sm:$0xff]  ;;  %s2315_s0 = sshll.u32 %s3853_s10, 10 }
  0xe8   : > { %2577 = vmatprep.subr.bf16.mxu1 %v2576_v9  ;;  %2589 = vmatprep.subr.bf16.mxu0 %v2588_v22  ;;  %v705_v32 = vld [vmem:[%s3460_s2 + $0x30] sm:$0xff]  ;;  %v706_v33 = vld [vmem:[%s3460_s2 + $0x38] sm:$0xff]  ;;  %v3521_v34 = vld [vmem:[%s3799_s3] ss:$0 sm:$0xff]  ;;  %s2997_s2 = scalar_lea.vmem %s3742_s28, 1024 }
  0xe9   : > { %v2286_v40 = vld [vmem:[%s3803_s7] ss:$0 sm:$0xff]  ;;  %p2998_p1 = scmp.ne.s32.totalorder %s3742_s28, %s2997_s2  ;;  %p3005_p7 = scmp.lt.s32.totalorder %s3003_s6, %s2997_s2 }
  0xea   : > { %2417 = vmatmul.mubr.msk.f32.vlgmr.msra.gmra.mrb[0].mxu1 %vm536_vm0, %v518_v13  ;;  %v2277_v52 = vld [vmem:[%s3851_s20] ss:$0 sm:$0xff] }
  0xeb   : > { %2579 = vmatpush3.bf16.msra.mxu1 %v2576_v9  ;;  %2419 = vmatprep.mubr.msk.f32.mxu1 %vm536_vm0, %v519_v16  ;;  %p2999_p8 = pnand %p2998_p1, %p3346_p5  ;;  %p3006_p12 = por %p3005_p7, %p3004_p3 }
  0xec   : > { %2581 = vmatprep.subr.bf16.mxu1 %v2580_v17  ;;  %2591 = vmatpush3.bf16.msra.mxu0 %v2588_v22  ;;  %s3747_s23 = scalar_lea.hbm %s3854_s11, %s2315_s0 }
  0xed   : > { %p3000_p10 = pneg %p2999_p8 }
  0xee   : > { %2420 = vmatmul.mubr.msk.f32.gmra.mrb[2].mxu1 %vm536_vm0, %v520_v21 }
  0xef   : > { %2422 = vmatprep.mubr.msk.f32.mxu1 %vm536_vm0, %v521_v23  ;;  %2583 = vmatpush3.bf16.msra.mxu1 %v2580_v17  ;;  %p3007_p6 = pnand %p3006_p12, %p3000_p10 }
  0xf0   : > { %2656 = vmatprep.subr.bf16.mxu1 %v2584_v18  ;;  %2457 = vmatmul.mubr.msk.f32.vlgmr.msra.gmra.mrb[0].mxu0 %vm536_vm0, %v700_v26 }
  0xf1   : > { %2459 = vmatprep.mubr.msk.f32.mxu0 %vm536_vm0, %v701_v28 }
  0xf2   : > { %2423 = vmatmul.mubr.msk.f32.gmra.mrb[4].mxu1 %vm536_vm0, %v522_v24 }
  0xf3   : > { %2425 = vmatprep.mubr.msk.f32.mxu1 %vm536_vm0, %v523_v25 }
  0xf4   : > { %2460 = vmatmul.mubr.msk.f32.gmra.mrb[2].mxu0 %vm536_vm0, %v702_v29 }
  0xf6   : > { %2426 = vmatmul.mubr.msk.f32.gmra.mrb[6].mxu1 %vm536_vm0, %v524_v27 }
  0xf7   : > { %2436 = vmatprep.mubr.msk.f32.mxu1 %vm536_vm0, %v699_v10 }
  0xfa   : > { %2437 = vmatmul.mubr.msk.f32.vlgmr.msra.gmra.mrb[8].mxu1 %vm536_vm0, %v700_v26 }
  0xfb   : > { %2439 = vmatprep.mubr.msk.f32.mxu1 %vm536_vm0, %v701_v28  ;;  %2658 = vmatpush3.bf16.msra.mxu1 %v2584_v18 }
  0xfc   : > { %2657 = vmatprep.subr.bf16.mxu1 %v2588_v22 }
  0xfe   : > { %2440 = vmatmul.mubr.msk.f32.gmra.mrb[10].mxu1 %vm536_vm0, %v702_v29  ;;  %v3105_v29 = vmov -inf  }
  0xff   : > { %2442 = vmatprep.mubr.msk.f32.mxu1 %vm536_vm0, %v703_v30  ;;  %2659 = vmatpush3.bf16.msra.mxu1 %v2588_v22  ;;  %675 = vst.msk [vmem:[#allocation3] sm:$0xff] %vm674_vm1, %v3105_v29  ;;  %676 = vst.msk [vmem:[#allocation3 + $0x8] sm:$0xff] %vm674_vm1, %v3105_v29 }
 0x100   : > { %677 = vst.msk [vmem:[#allocation3 + $0x10] sm:$0xff] %vm674_vm1, %v3105_v29  ;;  %678 = vst.msk [vmem:[#allocation3 + $0x18] sm:$0xff] %vm674_vm1, %v3105_v29 }
 0x101   : > { %679 = vst.msk [vmem:[#allocation3 + $0x20] sm:$0xff] %vm674_vm1, %v3105_v29  ;;  %680 = vst.msk [vmem:[#allocation3 + $0x28] sm:$0xff] %vm674_vm1, %v3105_v29 }
 0x102   : > { %2443 = vmatmul.mubr.msk.f32.gmra.mrb[12].mxu1 %vm536_vm0, %v704_v31  ;;  %681 = vst.msk [vmem:[#allocation3 + $0x30] sm:$0xff] %vm674_vm1, %v3105_v29  ;;  %682 = vst.msk [vmem:[#allocation3 + $0x38] sm:$0xff] %vm674_vm1, %v3105_v29 }
 0x103   : > { %2445 = vmatprep.mubr.msk.f32.mxu1 %vm536_vm0, %v705_v32 }
 0x106   : > { %2446 = vmatmul.mubr.msk.f32.gmra.mrb[14].mxu1 %vm536_vm0, %v706_v33 }
 0x107   : > { %2462 = vmatprep.mubr.msk.f32.mxu1 %vm536_vm0, %v703_v30 }
 0x10a   : > { %2463 = vmatmul.mubr.msk.f32.vlgmr.msra.gmra.mrb[16].mxu1 %vm536_vm0, %v704_v31 }
 0x10b   : > { %2465 = vmatprep.mubr.msk.f32.mxu1 %vm536_vm0, %v705_v32 }
 0x10e   : > { %2466 = vmatmul.mubr.msk.f32.gmra.mrb[18].mxu1 %vm536_vm0, %v706_v33 }
 0x1bd   : > { %v2418_v35 = vpop.f32.mrb[0].mxu1 }
 0x1be   : > { %v627_v36 = vpop.f32.mrb[1].mxu1  ;;  %v633_v7 = vadd.f32 %v2418_v35, %v3521_v34 }
 0x1bf   : > { %v628_v37 = vadd.f32 %v3521_v34, %v627_v36 }
 0x1c1   : > { %v2421_v38 = vpop.f32.mrb[2].mxu1  ;;  %2472 = vmatprep.mubr.f32.mxu1 %v628_v37 }
 0x1c2   : > { %v637_v39 = vpop.f32.mrb[3].mxu1  ;;  %v643_v19 = vadd.f32 %v2421_v38, %v3521_v34 }
 0x1c3   : > { %v2458_v43 = vpop.f32.mrb[0].mxu0  ;;  %v638_v10 = vadd.f32 %v3521_v34, %v637_v39 }
 0x1c4   : > { %v931_v45 = vadd.f32 %v2458_v43, %v2286_v40  ;;  %v925_v46 = vpop.f32.mrb[1].mxu0 }
 0x1c5   : > { %v2424_v41 = vpop.f32.mrb[4].mxu1  ;;  %v926_v47 = vadd.f32 %v2286_v40, %v925_v46 }
 0x1c6   : > { %v647_v42 = vpop.f32.mrb[5].mxu1  ;;  %v653_v22 = vadd.f32 %v2424_v41, %v3521_v34 }
 0x1c7   : > { %v648_v44 = vadd.f32 %v3521_v34, %v647_v42  ;;  %v2608_v50 = vpack.c.bf16 %v931_v45, %v926_v47  ;;  %v2461_v51 = vpop.f32.mrb[2].mxu0  ;;  %v3106_v45 = vmov 0   ;;  %v3107_v47 = vmov 0.0  }
 0x1c8   : > { %v941_v53 = vadd.f32 %v2461_v51, %v2286_v40  ;;  %v935_v54 = vpop.f32.mrb[3].mxu0  ;;  %2775 = vset.pattern.permute.xlu0 %v3106_v45  ;;  %2776 = vset.pattern.permute.xlu1 %v3106_v45  ;;  %683 = vst.msk [vmem:[#allocation4] sm:$0xff] %vm674_vm1, %v3107_v47  ;;  %684 = vst.msk [vmem:[#allocation4 + $0x8] sm:$0xff] %vm674_vm1, %v3107_v47  ;;  %v3596_v51 = vld [vmem:[#allocation3 + $0x8] sm:$0xff] }
 0x1c9   : > { %v2427_v48 = vpop.f32.mrb[6].mxu1  ;;  %2486 = vmatprep.mubr.f32.mxu0 %v648_v44  ;;  %v936_v55 = vadd.f32 %v2286_v40, %v935_v54  ;;  %685 = vst.msk [vmem:[#allocation4 + $0x10] sm:$0xff] %vm674_vm1, %v3107_v47  ;;  %686 = vst.msk [vmem:[#allocation4 + $0x18] sm:$0xff] %vm674_vm1, %v3107_v47 }
 0x1ca   : > { %v657_v49 = vpop.f32.mrb[7].mxu1  ;;  %v663_v28 = vadd.f32 %v2427_v48, %v3521_v34  ;;  %687 = vst.msk [vmem:[#allocation4 + $0x20] sm:$0xff] %vm674_vm1, %v3107_v47  ;;  %688 = vst.msk [vmem:[#allocation4 + $0x28] sm:$0xff] %vm674_vm1, %v3107_v47  ;;  %v3591_v48 = vld [vmem:[#allocation3] sm:$0xff] }
 0x1cb   : > { %v2612_v59 = vpack.c.bf16 %v941_v53, %v936_v55  ;;  %v658_v25 = vadd.f32 %v3521_v34, %v657_v49  ;;  %689 = vst.msk [vmem:[#allocation4 + $0x30] sm:$0xff] %vm674_vm1, %v3107_v47  ;;  %690 = vst.msk [vmem:[#allocation4 + $0x38] sm:$0xff] %vm674_vm1, %v3107_v47  ;;  %v3606_v55 = vld [vmem:[#allocation3 + $0x10] sm:$0xff] }
 0x1cd   : > { %v2438_v56 = vpop.f32.mrb[8].mxu1 }
 0x1ce   : > { %v815_v57 = vadd.f32 %v2438_v56, %v2277_v52  ;;  %v809_v58 = vpop.f32.mrb[9].mxu1 }
 0x1cf   : > { %v810_v60 = vadd.f32 %v2277_v52, %v809_v58 }
 0x1d1   : > { %v2592_v61 = vpack.c.bf16 %v815_v57, %v810_v60  ;;  %v2441_v62 = vpop.f32.mrb[10].mxu1  ;;  %v3613_v57 = vld [vmem:[#allocation3 + $0x20] sm:$0xff] }
 0x1d2   : > { %v825_v63 = vadd.f32 %v2441_v62, %v2277_v52  ;;  %v819_v0 = vpop.f32.mrb[11].mxu1  ;;  %v3621_v62 = vld [vmem:[#allocation3 + $0x18] sm:$0xff] }
 0x1d3   : > { %2593 = vmatprep.subr.bf16.mxu1 %v2592_v61  ;;  %v820_v1 = vadd.f32 %v2277_v52, %v819_v0 }
 0x1d4   : > { %2595 = vmatpush3.bf16.xpose.msra.mxu1 %v2592_v61 }
 0x1d5   : > { %v2596_v2 = vpack.c.bf16 %v825_v63, %v820_v1  ;;  %v2444_v3 = vpop.f32.mrb[12].mxu1 }
 0x1d6   : > { %v835_v4 = vadd.f32 %v2444_v3, %v2277_v52  ;;  %v829_v5 = vpop.f32.mrb[13].mxu1  ;;  %v3634_v3 = vld [vmem:[#allocation3 + $0x28] sm:$0xff] }
 0x1d7   : > { %v830_v6 = vadd.f32 %v2277_v52, %v829_v5  ;;  %2597 = vmatprep.subr.bf16.mxu1 %v2596_v2 }
 0x1d9   : > { %v2600_v8 = vpack.c.bf16 %v835_v4, %v830_v6  ;;  %v2447_v9 = vpop.f32.mrb[14].mxu1  ;;  %v3636_v4 = vld [vmem:[#allocation3 + $0x30] sm:$0xff] }
 0x1da   : > { %v845_v11 = vadd.f32 %v2447_v9, %v2277_v52  ;;  %v839_v12 = vpop.f32.mrb[15].mxu1 }
 0x1db   : > { %2473 = vmatmul.mubr.f32.vlgmr.msra.gmra.mrb[20].mxu1 %v633_v7  ;;  %2601 = vmatprep.subr.bf16.mxu0 %v2600_v8  ;;  %v840_v13 = vadd.f32 %v2277_v52, %v839_v12 }
 0x1dc   : > { %2599 = vmatpush3.bf16.xpose.msra.mxu1 %v2596_v2  ;;  %2479 = vmatprep.mubr.f32.mxu1 %v638_v10  ;;  %v3649_v10 = vld [vmem:[#allocation3 + $0x38] sm:$0xff] }
 0x1dd   : > { %2603 = vmatpush3.bf16.xpose.msra.mxu0 %v2600_v8  ;;  %v2604_v14 = vpack.c.bf16 %v845_v11, %v840_v13  ;;  %v2464_v15 = vpop.f32.mrb[16].mxu1 }
 0x1de   : > { %v951_v16 = vadd.f32 %v2464_v15, %v2286_v40  ;;  %v945_v17 = vpop.f32.mrb[17].mxu1  ;;  %2609 = vmatprep.subr.bf16.mxu0 %v2608_v50 }
 0x1df   : > { %2605 = vmatprep.subr.bf16.mxu1 %v2604_v14  ;;  %v946_v18 = vadd.f32 %v2286_v40, %v945_v17 }
 0x1e1   : > { %v3534_v20 = vpack.c.bf16 %v951_v16, %v946_v18  ;;  %v2467_v21 = vpop.f32.mrb[18].mxu1 }
 0x1e2   : > { %v961_v23 = vadd.f32 %v2467_v21, %v2286_v40  ;;  %v955_v24 = vpop.f32.mrb[19].mxu1 }
 0x1e3   : > { %2480 = vmatmul.mubr.f32.vlgmr.msra.gmra.mrb[22].mxu1 %v643_v19  ;;  %v956_v26 = vadd.f32 %v2286_v40, %v955_v24 }
 0x1e4   : > { %2487 = vmatmul.mubr.f32.vlgmr.msra.gmra.mrb[4].mxu0 %v653_v22  ;;  %2607 = vmatpush3.bf16.xpose.msra.mxu1 %v2604_v14 }
 0x1e5   : > { %2493 = vmatprep.mubr.f32.mxu1 %v658_v25  ;;  %v3538_v27 = vpack.c.bf16 %v961_v23, %v956_v26  ;;  %2611 = vmatpush3.bf16.msra.mxu0 %v2608_v50 }
 0x1e6   : > { %2617 = vmatprep.subr.bf16.mxu0 %v3534_v20  ;;  %2613 = vmatprep.subr.bf16.mxu1 %v2612_v59 }
 0x1eb   : > { %2494 = vmatmul.mubr.f32.vlgmr.msra.gmra.mrb[24].mxu1 %v663_v28 }
 0x1ec   : > { %2615 = vmatpush3.bf16.msra.mxu1 %v2612_v59 }
 0x1ed   : > { %2621 = vmatprep.subr.bf16.mxu1 %v3538_v27 }
 0x2ae   : > { %v3551_v30 = vpop.f32.mrb[20].mxu1 }
 0x2af   : > { %v3553_v31 = vpop.f32.mrb[21].mxu1  ;;  %v1284_v33 = vsel %vm1280_vm2, %v3551_v30, -inf }
 0x2b0   : > { %v1281_v32 = vsel %vm1280_vm2, %v3553_v31, -inf }
 0x2b1   : > { %1282 = vmax.xlane.f32.xlu0 %v1281_v32 }
 0x2b5   : > { %1285 = vmax.xlane.f32.xlu0 %v1284_v33 }
 0x2b6   : > { %v3559_v34 = vpop.f32.mrb[22].mxu1 }
 0x2b7   : > { %v3561_v35 = vpop.f32.mrb[4].mxu0  ;;  %v3563_v36 = vpop.f32.mrb[23].mxu1  ;;  %v1290_v40 = vsel %vm1280_vm2, %v3559_v34, -inf }
 0x2b8   : > { %v3565_v37 = vpop.f32.mrb[5].mxu0  ;;  %v1287_v38 = vsel %vm1280_vm2, %v3563_v36, -inf  ;;  %v1296_v43 = vsel %vm1280_vm2, %v3561_v35, -inf }
 0x2b9   : > { %v1293_v39 = vsel %vm1280_vm2, %v3565_v37, -inf  ;;  %1288 = vmax.xlane.f32.xlu1 %v1287_v38 }
 0x2ba   : > { %1294 = vmax.xlane.f32.xlu0 %v1293_v39 }
 0x2bd   : > { %1291 = vmax.xlane.f32.xlu1 %v1290_v40 }
 0x2be   : > { %v3573_v41 = vpop.f32.mrb[24].mxu1 }
 0x2bf   : > { %v3575_v42 = vpop.f32.mrb[25].mxu1  ;;  %v1302_v46 = vsel %vm1280_vm2, %v3573_v41, -inf }
 0x2c0   : > { %v1299_v44 = vsel %vm1280_vm2, %v3575_v42, -inf }
 0x2c1   : > { %1297 = vmax.xlane.f32.xlu1 %v1296_v43  ;;  %1300 = vmax.xlane.f32.xlu0 %v1299_v44 }
 0x2c5   : > { %1303 = vmax.xlane.f32.xlu1 %v1302_v46 }
 0x33e   : > { %v1283_v49 = vpop.xlane.xlu0 %1282 }
 0x33f   : > { %v3594_v50 = vmax.f32 %v3591_v48, %v1283_v49 }
 0x341   : > { %v1313_v52 = vsub.f32 %v3591_v48, %v3594_v50  ;;  %1854 = vst.msk [vmem:[#allocation3] sm:$0xff] %vm674_vm1, %v3594_v50  ;;  %1339 = vperm.xlu0 %2775, %v3594_v50  }
 0x342   : > { %v1286_v53 = vpop.xlane.xlu0 %1285 }
 0x343   : > { %v3604_v54 = vmax.f32 %v3596_v51, %v1286_v53 }
 0x345   : > { %v1314_v56 = vsub.f32 %v3596_v51, %v3604_v54  ;;  %1855 = vst.msk [vmem:[#allocation3 + $0x8] sm:$0xff] %vm674_vm1, %v3604_v54  ;;  %1344 = vperm.xlu1 %2776, %v3604_v54   ;;  %v1937_v51 = vld [vmem:[#allocation15] sm:$0xff]  ;;  %v1939_v54 = vld [vmem:[#allocation15 + $0x10] sm:$0xff] }
 0x346   : > { %v1289_v58 = vpop.xlane.xlu1 %1288 }
 0x347   : > { %v1295_v59 = vpop.xlane.xlu0 %1294  ;;  %v3616_v60 = vmax.f32 %v3606_v55, %v1289_v58 }
 0x348   : > { %v3619_v61 = vmax.f32 %v3613_v57, %v1295_v59 }
 0x349   : > { %v1315_v63 = vsub.f32 %v3606_v55, %v3616_v60  ;;  %1856 = vst.msk [vmem:[#allocation3 + $0x10] sm:$0xff] %vm674_vm1, %v3616_v60 }
 0x34a   : > { %v1317_v0 = vsub.f32 %v3613_v57, %v3619_v61  ;;  %1858 = vst.msk [vmem:[#allocation3 + $0x20] sm:$0xff] %vm674_vm1, %v3619_v61  ;;  %v1292_v1 = vpop.xlane.xlu1 %1291 }
 0x34b   : > { %v3632_v2 = vmax.f32 %v3621_v62, %v1292_v1 }
 0x34d   : > { %v1316_v5 = vsub.f32 %v3621_v62, %v3632_v2  ;;  %1857 = vst.msk [vmem:[#allocation3 + $0x18] sm:$0xff] %vm674_vm1, %v3632_v2  ;;  %1354 = vperm.xlu1 %2776, %v3632_v2   ;;  %v1941_v62 = vld [vmem:[#allocation15 + $0x20] sm:$0xff] }
 0x34e   : > { %v1298_v6 = vpop.xlane.xlu1 %1297  ;;  %v1301_v7 = vpop.xlane.xlu0 %1300 }
 0x34f   : > { %v3644_v8 = vmax.f32 %v3634_v3, %v1298_v6  ;;  %v3647_v9 = vmax.f32 %v3636_v4, %v1301_v7 }
 0x351   : > { %v1318_v11 = vsub.f32 %v3634_v3, %v3644_v8  ;;  %1859 = vst.msk [vmem:[#allocation3 + $0x28] sm:$0xff] %vm674_vm1, %v3644_v8  ;;  %v1319_v12 = vsub.f32 %v3636_v4, %v3647_v9  ;;  %1860 = vst.msk [vmem:[#allocation3 + $0x30] sm:$0xff] %vm674_vm1, %v3647_v9  ;;  %1364 = vperm.xlu1 %2776, %v3644_v8   ;;  %v1947_v4 = vld [vmem:[#allocation15 + $0x50] sm:$0xff] }
 0x352   : > { %v1304_v13 = vpop.xlane.xlu1 %1303 }
 0x353   : > { %v3661_v14 = vmax.f32 %v3649_v10, %v1304_v13  ;;  %v1333_v3 = vmul.f32 1.442695, %v1319_v12 }
 0x355   : > { %v1320_v15 = vsub.f32 %v3649_v10, %v3661_v14  ;;  %1861 = vst.msk [vmem:[#allocation3 + $0x38] sm:$0xff] %vm674_vm1, %v3661_v14  ;;  %1349 = vperm.xlu1 %2776, %v3616_v60  }
 0x359   : > { %1359 = vperm.xlu1 %2776, %v3619_v61   ;;  %v1335_v61 = vmul.f32 1.442695, %v1320_v15 }
 0x35d   : > { %1369 = vperm.xlu1 %2776, %v3647_v9   ;;  %v1948_v9 = vld [vmem:[#allocation15 + $0x58] sm:$0xff] }
 0x361   : > { %1374 = vperm.xlu1 %2776, %v3661_v14  }
 0x3c0   : > { %v1340_v16 = vpop.permute.xlu0 %1339 }
 0x3c1   : > { %v1377_v17 = vsub.f32 %v3553_v31, %v1340_v16 }
 0x3c3   : > { %v1385_v18 = vmul.f32 1.442695, %v1377_v17  ;;  %v1323_v17 = vmul.f32 1.442695, %v1314_v56  ;;  %v1940_v56 = vld [vmem:[#allocation15 + $0x18] sm:$0xff] }
 0x3c4   : > { %v1345_v19 = vpop.permute.xlu1 %1344  ;;  %v2628_v60 = vpack.c.bf16 %v1940_v56, %v1939_v54 }
 0x3c5   : > { %2777 = vpow2.f32 %v1385_v18  ;;  %v1378_v21 = vsub.f32 %v3551_v30, %v1345_v19  ;;  %v1325_v18 = vmul.f32 1.442695, %v1315_v63  ;;  %v1327_v19 = vmul.f32 1.442695, %v1316_v5  ;;  %v1942_v63 = vld [vmem:[#allocation15 + $0x28] sm:$0xff]  ;;  %v1943_v5 = vld [vmem:[#allocation15 + $0x30] sm:$0xff] }
 0x3c6   : > { %v2632_v2 = vpack.c.bf16 %v1942_v63, %v1941_v62 }
 0x3c7   : > { %v1387_v22 = vmul.f32 1.442695, %v1378_v21 }
 0x3c9   : > { %2779 = vpow2.f32 %v1387_v22 }
 0x3cc   : > { %v1355_v23 = vpop.permute.xlu1 %1354 }
 0x3cd   : > { %v1380_v24 = vsub.f32 %v3559_v34, %v1355_v23  ;;  %v1944_v23 = vld [vmem:[#allocation15 + $0x38] sm:$0xff] }
 0x3cf   : > { %v2778_v25 = vpop.eup %2777  ;;  %v1391_v26 = vmul.f32 1.442695, %v1380_v24  ;;  %v2636_v24 = vpack.c.bf16 %v1944_v23, %v1943_v5 }
 0x3d0   : > { %v1365_v28 = vpop.permute.xlu1 %1364  ;;  %2500 = vmatprep.mubr.msk.f32.mxu0 %vm1280_vm2, %v2778_v25  ;;  %v1417_v29 = vsel %vm1280_vm2, %v2778_v25, 0.0  ;;  %v1401_v25 = vld [vmem:[#allocation4] sm:$0xff] }
 0x3d1   : > { %2781 = vpow2.f32 %v1391_v26  ;;  %v1382_v31 = vsub.f32 %v3561_v35, %v1365_v28  ;;  %1418 = vadd.xlane.f32.xlu1 %v1417_v29  ;;  %v1331_v26 = vmul.f32 1.442695, %v1318_v11  ;;  %v1945_v11 = vld [vmem:[#allocation15 + $0x40] sm:$0xff] }
 0x3d3   : > { %v2780_v32 = vpop.eup %2779  ;;  %v1395_v33 = vmul.f32 1.442695, %v1382_v31  ;;  %v1402_v31 = vld [vmem:[#allocation4 + $0x8] sm:$0xff] }
 0x3d4   : > { %v1350_v38 = vpop.permute.xlu1 %1349  ;;  %2501 = vmatmul.mubr.msk.f32.vlgmr.msra.gmra.mrb[6].mxu0 %vm1280_vm2, %v2780_v32  ;;  %v1420_v30 = vsel %vm1280_vm2, %v2780_v32, 0.0 }
 0x3d5   : > { %2783 = vpow2.f32 %v1395_v33  ;;  %v1379_v34 = vsub.f32 %v3563_v36, %v1350_v38  ;;  %2619 = vmatpush3.bf16.msra.mxu0 %v3534_v20  ;;  %1421 = vadd.xlane.f32.xlu0 %v1420_v30 }
 0x3d7   : > { %v1389_v39 = vmul.f32 1.442695, %v1379_v34  ;;  %v1329_v34 = vmul.f32 1.442695, %v1317_v0 }
 0x3d8   : > { %v1360_v40 = vpop.permute.xlu1 %1359 }
 0x3d9   : > { %2785 = vpow2.f32 %v1389_v39  ;;  %v1381_v43 = vsub.f32 %v3565_v37, %v1360_v40  ;;  %v1404_v39 = vld [vmem:[#allocation4 + $0x18] sm:$0xff]  ;;  %v1946_v40 = vld [vmem:[#allocation15 + $0x48] sm:$0xff] }
 0x3db   : > { %v2782_v35 = vpop.eup %2781  ;;  %v1393_v44 = vmul.f32 1.442695, %v1381_v43 }
 0x3dc   : > { %v1370_v45 = vpop.permute.xlu1 %1369  ;;  %v1426_v46 = vsel %vm1280_vm2, %v2782_v35, 0.0 }
 0x3dd   : > { %2787 = vpow2.f32 %v1393_v44  ;;  %v1383_v47 = vsub.f32 %v3575_v42, %v1370_v45  ;;  %1427 = vadd.xlane.f32.xlu1 %v1426_v46  ;;  %v1406_v46 = vld [vmem:[#allocation4 + $0x28] sm:$0xff] }
 0x3df   : > { %v2784_v49 = vpop.eup %2783  ;;  %v1397_v53 = vmul.f32 1.442695, %v1383_v47  ;;  %v2644_v47 = vpack.c.bf16 %v1948_v9, %v1947_v4 }
 0x3e0   : > { %v1375_v36 = vpop.permute.xlu1 %1374  ;;  %v1432_v20 = vsel %vm1280_vm2, %v2784_v49, 0.0 }
 0x3e1   : > { %2789 = vpow2.f32 %v1397_v53  ;;  %v1384_v58 = vsub.f32 %v3573_v41, %v1375_v36  ;;  %1433 = vadd.xlane.f32.xlu1 %v1432_v20  ;;  %v1950_v53 = vld [vmem:[#allocation15 + $0x68] sm:$0xff]  ;;  %v1403_v20 = vld [vmem:[#allocation4 + $0x10] sm:$0xff] }
 0x3e3   : > { %v2786_v59 = vpop.eup %2785  ;;  %v1399_v37 = vmul.f32 1.442695, %v1384_v58 }
 0x3e4   : > { %2507 = vmatprep.mubr.msk.f32.mxu1 %vm1280_vm2, %v2786_v59  ;;  %v1423_v1 = vsel %vm1280_vm2, %v2786_v59, 0.0 }
 0x3e5   : > { %2791 = vpow2.f32 %v1399_v37  ;;  %2508 = vmatmul.mubr.msk.f32.vlgmr.msra.gmra.mrb[26].mxu1 %vm1280_vm2, %v2782_v35  ;;  %1424 = vadd.xlane.f32.xlu0 %v1423_v1  ;;  %v2640_v35 = vpack.c.bf16 %v1946_v40, %v1945_v11  ;;  %v1405_v37 = vld [vmem:[#allocation4 + $0x20] sm:$0xff] }
 0x3e6   : > { %2623 = vmatpush3.bf16.msra.mxu1 %v3538_v27  ;;  %v1321_v27 = vmul.f32 1.442695, %v1313_v52  ;;  %v1938_v52 = vld [vmem:[#allocation15 + $0x8] sm:$0xff] }
 0x3e7   : > { %v2788_v42 = vpop.eup %2787  ;;  %v2624_v55 = vpack.c.bf16 %v1938_v52, %v1937_v51 }
 0x3e8   : > { %2514 = vmatprep.mubr.msk.f32.mxu0 %vm1280_vm2, %v2788_v42  ;;  %v1429_v6 = vsel %vm1280_vm2, %v2788_v42, 0.0  ;;  %2793 = vpow2.f32 %v1321_v27 }
 0x3e9   : > { %1430 = vadd.xlane.f32.xlu0 %v1429_v6  ;;  %2515 = vmatmul.mubr.msk.f32.vlgmr.msra.gmra.mrb[8].mxu0 %vm1280_vm2, %v2784_v49  ;;  %2795 = vpow2.f32 %v1323_v17  ;;  %v1949_v49 = vld [vmem:[#allocation15 + $0x60] sm:$0xff]  ;;  %v1951_v6 = vld [vmem:[#allocation15 + $0x70] sm:$0xff] }
 0x3ea   : > { %2797 = vpow2.f32 %v1325_v18  ;;  %2625 = vmatprep.subr.bf16.mxu0 %v2624_v55  ;;  %v2648_v58 = vpack.c.bf16 %v1950_v53, %v1949_v49  ;;  %v1407_v17 = vld [vmem:[#allocation4 + $0x30] sm:$0xff] }
 0x3eb   : > { %v2790_v41 = vpop.eup %2789  ;;  %2799 = vpow2.f32 %v1327_v19  ;;  %2627 = vmatpush3.bf16.msra.mxu0 %v2624_v55 }
 0x3ec   : > { %2521 = vmatprep.mubr.msk.f32.mxu1 %vm1280_vm2, %v2790_v41  ;;  %v1435_v7 = vsel %vm1280_vm2, %v2790_v41, 0.0  ;;  %2629 = vmatprep.subr.bf16.mxu0 %v2628_v60  ;;  %2801 = vpow2.f32 %v1331_v26  ;;  %v1952_v41 = vld [vmem:[#allocation15 + $0x78] sm:$0xff] }
 0x3ed   : > { %1436 = vadd.xlane.f32.xlu0 %v1435_v7  ;;  %2803 = vpow2.f32 %v1329_v34 }
 0x3ee   : > { %2805 = vpow2.f32 %v1333_v3 }
 0x3ef   : > { %v2792_v13 = vpop.eup %2791  ;;  %2631 = vmatpush3.bf16.msra.mxu0 %v2628_v60  ;;  %2807 = vpow2.f32 %v1335_v61 }
 0x3f0   : > { %2522 = vmatmul.mubr.msk.f32.vlgmr.msra.gmra.mrb[28].mxu1 %vm1280_vm2, %v2792_v13  ;;  %v1438_v16 = vsel %vm1280_vm2, %v2792_v13, 0.0  ;;  %2633 = vmatprep.subr.bf16.mxu0 %v2632_v2  ;;  %v2652_v13 = vpack.c.bf16 %v1952_v41, %v1951_v6 }
 0x3f1   : > { %1439 = vadd.xlane.f32.xlu1 %v1438_v16 }
 0x3f2   : > { %v2794_v21 = vpop.eup %2793 }
 0x3f3   : > { %v2796_v22 = vpop.eup %2795  ;;  %2635 = vmatpush3.bf16.msra.mxu0 %v2632_v2  ;;  %v1409_v28 = vmul.f32 %v2794_v21, %v1401_v25 }
 0x3f4   : > { %v3709_v48 = vpop.eup %2797  ;;  %2637 = vmatprep.subr.bf16.mxu0 %v2636_v24  ;;  %v1410_v33 = vmul.f32 %v2796_v22, %v1402_v31 }
 0x3f5   : > { %v2800_v50 = vpop.eup %2799  ;;  %v1411_v10 = vmul.f32 %v3709_v48, %v1403_v20 }
 0x3f6   : > { %v1412_v43 = vmul.f32 %v2800_v50, %v1404_v39  ;;  %v3723_v44 = vpop.eup %2801 }
 0x3f7   : > { %2639 = vmatpush3.bf16.msra.mxu0 %v2636_v24  ;;  %v1414_v12 = vmul.f32 %v3723_v44, %v1406_v46  ;;  %v2804_v14 = vpop.eup %2803 }
 0x3f8   : > { %2641 = vmatprep.subr.bf16.mxu0 %v2640_v35  ;;  %v1413_v7 = vmul.f32 %v2804_v14, %v1405_v37  ;;  %v2806_v16 = vpop.eup %2805 }
 0x3fb   : > { %2643 = vmatpush3.bf16.msra.mxu0 %v2640_v35 }
 0x3fc   : > { %2645 = vmatprep.subr.bf16.mxu0 %v2644_v47 }
 0x3ff   : > { %2647 = vmatpush3.bf16.msra.mxu0 %v2644_v47 }
 0x400   : > { %2649 = vmatprep.subr.bf16.mxu0 %v2648_v58 }
 0x402   : > { %1468 = vperm.xlu1 %2776, %v2794_v21   ;;  %v1415_v21 = vmul.f32 %v2806_v16, %v1407_v17 }
 0x403   : > { %1473 = vperm.xlu0 %2775, %v2796_v22   ;;  %2651 = vmatpush3.bf16.msra.mxu0 %v2648_v58  ;;  %v2808_v22 = vpop.eup %2807 }
 0x404   : > { %2653 = vmatprep.subr.bf16.mxu0 %v2652_v13 }
 0x406   : > { %1478 = vperm.xlu1 %2776, %v3709_v48  }
 0x407   : > { %1483 = vperm.xlu0 %2775, %v2800_v50   ;;  %2655 = vmatpush3.bf16.msra.mxu0 %v2652_v13  ;;  %v1408_v50 = vld [vmem:[#allocation4 + $0x38] sm:$0xff] }
 0x408   : > { %v1416_v54 = vmul.f32 %v2808_v22, %v1408_v50 }
 0x45e   : > { %v1419_v29 = vpop.xlane.xlu1 %1418 }
 0x45f   : > { %v1441_v32 = vadd.f32 %v1419_v29, %v1409_v28 }
 0x461   : > { %1450 = vst.msk [vmem:[#allocation4] sm:$0xff] %vm674_vm1, %v1441_v32 }
 0x462   : > { %v1422_v38 = vpop.xlane.xlu0 %1421 }
 0x463   : > { %v1442_v30 = vadd.f32 %v1422_v38, %v1410_v33 }
 0x465   : > { %1451 = vst.msk [vmem:[#allocation4 + $0x8] sm:$0xff] %vm674_vm1, %v1442_v30 }
 0x468   : > { %v1873_v8 = vld [vmem:[#allocation4] sm:$0xff] }
 0x469   : > { %1883 = vperm.xlu0 %2775, %v1873_v8  }
 0x46a   : > { %v1428_v45 = vpop.xlane.xlu1 %1427 }
 0x46b   : > { %v1444_v57 = vadd.f32 %v1428_v45, %v1412_v43 }
 0x46c   : > { %v1874_v0 = vld [vmem:[#allocation4 + $0x8] sm:$0xff] }
 0x46d   : > { %1453 = vst.msk [vmem:[#allocation4 + $0x18] sm:$0xff] %vm674_vm1, %v1444_v57  ;;  %1888 = vperm.xlu1 %2776, %v1874_v0  }
 0x46e   : > { %v1434_v36 = vpop.xlane.xlu1 %1433 }
 0x46f   : > { %v1446_v59 = vadd.f32 %v1434_v36, %v1414_v12 }
 0x471   : > { %1455 = vst.msk [vmem:[#allocation4 + $0x28] sm:$0xff] %vm674_vm1, %v1446_v59 }
 0x472   : > { %v1425_v15 = vpop.xlane.xlu0 %1424 }
 0x473   : > { %v1443_v1 = vadd.f32 %v1425_v15, %v1411_v10 }
 0x474   : > { %v1876_v42 = vld [vmem:[#allocation4 + $0x18] sm:$0xff] }
 0x475   : > { %1452 = vst.msk [vmem:[#allocation4 + $0x10] sm:$0xff] %vm674_vm1, %v1443_v1  ;;  %1898 = vperm.xlu0 %2775, %v1876_v42  }
 0x476   : > { %v1431_v27 = vpop.xlane.xlu0 %1430 }
 0x477   : > { %v1445_v18 = vadd.f32 %v1431_v27, %v1413_v7 }
 0x478   : > { %v1878_v19 = vld [vmem:[#allocation4 + $0x28] sm:$0xff] }
 0x479   : > { %1454 = vst.msk [vmem:[#allocation4 + $0x20] sm:$0xff] %vm674_vm1, %v1445_v18  ;;  %1908 = vperm.xlu0 %2775, %v1878_v19  }
 0x47a   : > { %v1437_v48 = vpop.xlane.xlu0 %1436 }
 0x47b   : > { %v1447_v51 = vadd.f32 %v1437_v48, %v1415_v21 }
 0x47c   : > { %v1875_v52 = vld [vmem:[#allocation4 + $0x10] sm:$0xff] }
 0x47d   : > { %1456 = vst.msk [vmem:[#allocation4 + $0x30] sm:$0xff] %vm674_vm1, %v1447_v51  ;;  %1893 = vperm.xlu1 %2776, %v1875_v52   ;;  %v2303_v51 = vld [vmem:[%s3852_s4] ss:$0 sm:$0xff] }
 0x47e   : > { %v1440_v55 = vpop.xlane.xlu1 %1439 }
 0x47f   : > { %v1448_v56 = vadd.f32 %v1440_v55, %v1416_v54 }
 0x480   : > { %v1877_v60 = vld [vmem:[#allocation4 + $0x20] sm:$0xff] }
 0x481   : > { %1457 = vst.msk [vmem:[#allocation4 + $0x38] sm:$0xff] %vm674_vm1, %v1448_v56  ;;  %1903 = vperm.xlu1 %2776, %v1877_v60  }
 0x482   : > { %v1474_v31 = vpop.permute.xlu0 %1473  ;;  %v1469_v32 = vpop.permute.xlu1 %1468 }
 0x483   : > { %v1506_v39 = vmul.f32 0.0, %v1469_v32  ;;  %v1507_v11 = vmul.f32 0.0, %v1474_v31 }
 0x484   : > { %v1879_v62 = vld [vmem:[#allocation4 + $0x30] sm:$0xff] }
 0x485   : > { %1913 = vperm.xlu1 %2776, %v1879_v62  }
 0x486   : > { %v1484_v33 = vpop.permute.xlu0 %1483  ;;  %v1479_v38 = vpop.permute.xlu1 %1478 }
 0x487   : > { %v1508_v0 = vmul.f32 0.0, %v1479_v38  ;;  %v1509_v9 = vmul.f32 0.0, %v1484_v33 }
 0x488   : > { %v1880_v63 = vld [vmem:[#allocation4 + $0x38] sm:$0xff] }
 0x489   : > { %1918 = vperm.xlu0 %2775, %v1880_v63   ;;  %1488 = vperm.xlu1 %2776, %v2804_v14  }
 0x48d   : > { %1493 = vperm.xlu0 %2775, %v3723_v44   ;;  %1498 = vperm.xlu1 %2776, %v2806_v16  }
 0x491   : > { %1503 = vperm.xlu0 %2775, %v2808_v22  }
 0x4a7   : > { %v2502_v2 = vpop.f32.mrb[6].mxu0 }
 0x4a8   : > { %v1586_v5 = vpop.f32.mrb[7].mxu0  ;;  %v1839_v43 = vadd.f32 %v2502_v2, %v1507_v11 }
 0x4a9   : > { %v1838_v3 = vadd.f32 %v1586_v5, %v1506_v39 }
 0x4b8   : > { %v2509_v23 = vpop.f32.mrb[26].mxu1 }
 0x4b9   : > { %v1667_v24 = vpop.f32.mrb[27].mxu1  ;;  %v1841_v53 = vadd.f32 %v2509_v23, %v1509_v9 }
 0x4ba   : > { %v1840_v47 = vadd.f32 %v1667_v24, %v1508_v0 }
 0x4bc   : > { %v2516_v25 = vpop.f32.mrb[8].mxu0 }
 0x4bd   : > { %v1748_v26 = vpop.f32.mrb[9].mxu0 }
 0x4c3   : > { %v2523_v28 = vpop.f32.mrb[28].mxu1 }
 0x4c4   : > { %v1829_v29 = vpop.f32.mrb[29].mxu1 }
 0x4e8   : > { %v1884_v30 = vpop.permute.xlu0 %1883 }
 0x4e9   : > { %2809 = vrcp.f32 %v1884_v30 }
 0x4ec   : > { %v1889_v34 = vpop.permute.xlu1 %1888 }
 0x4ed   : > { %2811 = vrcp.f32 %v1889_v34 }
 0x4f3   : > { %v2810_v8 = vpop.eup %2809 }
 0x4f4   : > { %v1922_v40 = vmul.f32 %v2810_v8, %v1838_v3  ;;  %v1899_v45 = vpop.permute.xlu0 %1898 }
 0x4f5   : > { %2813 = vrcp.f32 %v1899_v45 }
 0x4f6   : > { %2556 = vmatprep.mubr.f32.mxu0 %v1922_v40 }
 0x4f7   : > { %v2812_v35 = vpop.eup %2811 }
 0x4f8   : > { %v1924_v44 = vmul.f32 %v2812_v35, %v1839_v43  ;;  %v1909_v61 = vpop.permute.xlu0 %1908 }
 0x4fa   : > { %2557 = vmatmul.mubr.f32.vlgmr.msra.gmra.mrb[10].mxu0 %v1924_v44 }
 0x4fc   : > { %v1894_v46 = vpop.permute.xlu1 %1893 }
 0x4fd   : > { %2815 = vrcp.f32 %v1894_v46 }
 0x4ff   : > { %v2814_v12 = vpop.eup %2813 }
 0x500   : > { %v1904_v57 = vpop.permute.xlu1 %1903  ;;  %v1928_v10 = vmul.f32 %v2814_v12, %v1841_v53 }
 0x501   : > { %2817 = vrcp.f32 %v1904_v57 }
 0x504   : > { %v1914_v4 = vpop.permute.xlu1 %1913 }
 0x505   : > { %2819 = vrcp.f32 %v1914_v4 }
 0x506   : > { %2821 = vrcp.f32 %v1909_v61 }
 0x507   : > { %v2816_v49 = vpop.eup %2815 }
 0x508   : > { %v1489_v36 = vpop.permute.xlu1 %1488  ;;  %v1919_v20 = vpop.permute.xlu0 %1918  ;;  %v1926_v58 = vmul.f32 %v2816_v49, %v1840_v47 }
 0x509   : > { %v1510_v59 = vmul.f32 0.0, %v1489_v36  ;;  %2823 = vrcp.f32 %v1919_v20 }
 0x50a   : > { %2559 = vmatprep.mubr.f32.mxu0 %v1926_v58 }
 0x50b   : > { %v2818_v14 = vpop.eup %2817  ;;  %v1842_v15 = vadd.f32 %v1748_v26, %v1510_v59  ;;  %2560 = vmatmul.mubr.f32.gmra.mrb[12].mxu0 %v1928_v10 }
 0x50c   : > { %v1499_v37 = vpop.permute.xlu1 %1498  ;;  %v1494_v1 = vpop.permute.xlu0 %1493 }
 0x50d   : > { %v1512_v42 = vmul.f32 0.0, %v1499_v37  ;;  %v1511_v6 = vmul.f32 0.0, %v1494_v1  ;;  %v1930_v41 = vmul.f32 %v2818_v14, %v1842_v15 }
 0x50f   : > { %v2820_v7 = vpop.eup %2819  ;;  %v1844_v13 = vadd.f32 %v1829_v29, %v1512_v42  ;;  %v1843_v16 = vadd.f32 %v2516_v25, %v1511_v6  ;;  %2562 = vmatprep.mubr.f32.mxu0 %v1930_v41 }
 0x510   : > { %v2822_v27 = vpop.eup %2821  ;;  %v1504_v17 = vpop.permute.xlu0 %1503 }
 0x511   : > { %v1934_v18 = vmul.f32 %v2820_v7, %v1844_v13  ;;  %v1513_v19 = vmul.f32 0.0, %v1504_v17  ;;  %v1932_v21 = vmul.f32 %v2822_v27, %v1843_v16 }
 0x513   : > { %v2824_v22 = vpop.eup %2823  ;;  %v1845_v48 = vadd.f32 %v2523_v28, %v1513_v19  ;;  %2563 = vmatmul.mubr.f32.gmra.mrb[14].mxu0 %v1932_v21 }
 0x514   : > { %2565 = vmatprep.mubr.f32.mxu0 %v1934_v18 }
 0x515   : > { %v1936_v50 = vmul.f32 %v2824_v22, %v1845_v48 }
 0x517   : > { %2566 = vmatmul.mubr.f32.gmra.mrb[16].mxu0 %v1936_v50 }
 0x5cd   : > { %v2558_v52 = vpop.f32.mrb[10].mxu0 }
 0x5ce   : > { %v2032_v54 = vadd.f32 %v2558_v52, %v2303_v51  ;;  %v2026_v55 = vpop.f32.mrb[11].mxu0 }
 0x5cf   : > { %v2027_v56 = vadd.f32 %v2303_v51, %v2026_v55 }
 0x5d0   : > { %2066 = vst [vmem:[%s506_s25 + $0x8] sm:$0xff] %v2032_v54 }
 0x5d1   : > { %2065 = vst [vmem:[%s506_s25] sm:$0xff] %v2027_v56 }
 0x5de   : > { %v2561_v60 = vpop.f32.mrb[12].mxu0 }
 0x5df   : > { %v2042_v62 = vadd.f32 %v2561_v60, %v2303_v51  ;;  %v2036_v63 = vpop.f32.mrb[13].mxu0 }
 0x5e0   : > { %v2037_v2 = vadd.f32 %v2303_v51, %v2036_v63 }
 0x5e1   : > { %2068 = vst [vmem:[%s506_s25 + $0x18] sm:$0xff] %v2042_v62 }
 0x5e2   : > { %2067 = vst [vmem:[%s506_s25 + $0x10] sm:$0xff] %v2037_v2 }
 0x5e6   : > { %v2564_v5 = vpop.f32.mrb[14].mxu0 }
 0x5e7   : > { %v2052_v23 = vadd.f32 %v2564_v5, %v2303_v51  ;;  %v2046_v24 = vpop.f32.mrb[15].mxu0 }
 0x5e8   : > { %v2047_v25 = vadd.f32 %v2303_v51, %v2046_v24 }
 0x5e9   : > { %2070 = vst [vmem:[%s506_s25 + $0x28] sm:$0xff] %v2052_v23 }
 0x5ea   : > { %2069 = vst [vmem:[%s506_s25 + $0x20] sm:$0xff] %v2047_v25  ;;  %v2567_v26 = vpop.f32.mrb[16].mxu0 }
 0x5eb   : > { %v2062_v28 = vadd.f32 %v2567_v26, %v2303_v51  ;;  %v2056_v29 = vpop.f32.mrb[17].mxu0 }
 0x5ec   : > { %v2057_v31 = vadd.f32 %v2303_v51, %v2056_v29 }
 0x5ed   : > { %2072 = vst [vmem:[%s506_s25 + $0x38] sm:$0xff] %v2062_v28 }
 0x5ee   : > { %2071 = vst [vmem:[%s506_s25 + $0x30] sm:$0xff] %v2057_v31 }
 0x5ef   : > { %3010 = shalt.err (!%p3007_p6)
}
 0x5f0   : > { %s3011_s26 = scalar_lea.hbm %s3747_s23, 1024  ;;  %s3015_s20 = scalar_lea.hbm %s3854_s11, 2048 }
 0x5f1   : > { %p3012_p11 = scmp.ne.s32.totalorder %s3747_s23, %s3011_s26  ;;  %p3016_p2 = scmp.lt.u32.totalorder %s3747_s23, %s3854_s11 }
 0x5f2   : > { %p3017_p13 = scmp.lt.u32.totalorder %s3015_s20, %s3011_s26  ;;  %p3019_p1 = scmp.lt.u32.totalorder %s3011_s26, %s3747_s23 }
 0x5f3   : > { %p3013_p9 = pnand %p3012_p11, %p3346_p5 }
 0x5f4   : > { %p3018_p4 = por %p3017_p13, %p3016_p2 }
 0x5f5   : > { %p3014_p0 = pneg %p3013_p9 }
 0x5f6   : > { %p3020_p8 = por %p3019_p1, %p3018_p4 }
 0x5f8   : > { %p3021_p10 = pnand %p3020_p8, %p3014_p0 }
 0x5fa   : > { %3024 = shalt.err (!%p3021_p10)
}
 0x5fb   : > { %s3109_s4 = smov 128   ;;  %s3110_s10 = smov 8  }
 0x5fc   : > { %2680 = dma.vmem_to_hbm [thread:$0]  (%p3346_p5), %s3742_s28, 1024, %s3747_s23, %s2074_s29, %s3109_s4, %s3109_s4, %s3110_s10  }
 0x5fd PF: > { %s3855_s25 = sld [smem:[#allocation24_spill]]  ;;  %s3856_s0 = sld [smem:[#allocation26_spill]] }
 0x5fe   : > { %p3858_p7 = scmp.ge.s32.totalorder %s3095_s18, 2 }
 0x603   : > { %s2105_s22 = sand.u32 1, %s3855_s25   ;;  %p3857_p3 = scmp.ne.s32.totalorder %s3856_s0, 0 }
 0x604   : > { %s2106_s5 = scalar_lea.sflag [#allocation8], %s2105_s22 }
 0x605   : > { %p2703_p12 = pnand %p3858_p7, %p3857_p3 }
 0x607   : > { %3070 = dma.done.wait (!%p2703_p12), %s2106_s5, 1024  }
 0x608   : > { %3072 = vsyncadd (!%p2703_p12), %s2106_s5, 4294966272  ;;  %s31_s18 = sadd.s32 1, %s3095_s18   ;;  %s3859_s9 = smov %s3866_s13 }
 0x609   : > { %p28_p6 = scmp.ge.s32.totalorder %s31_s18, 4   ;;  %s3860_s13 = smov %s3079_s14 }
 0x60a   : > { %s3861_s14 = smov %s3083_s15  ;;  %s3862_s15 = smov %s3357_s27 }
 0x60b   : > { %s3863_s16 = smov %s3091_s17  ;;  %s3864_s17 = smov %s3859_s9 }
 0x60c   :  { %30 = sbr.rel (!%p28_p6) target bundleno = 19 (0x13), region = 142 }
 0x613   :  { %2111 = vsyncpa [#allocation7], 1 }
 0x614   :  { %2113 = vsyncpa [#allocation7 + $0x1], 1 }
 0x615   :  { %2114 = vsyncpa [#allocation10], 1 }
 0x616   :  { %2116 = vsyncpa [#allocation10 + $0x1], 1 }
 0x617   :  { %2117 = vsyncpa [#allocation13], 1 }
 0x618   :  { %2118 = vsyncpa [#allocation16], 1 }
 0x619   :  { %2119 = vsyncpa [#allocation8], 1 }
 0x61a   :  { %2121 = vsyncpa [#allocation8 + $0x1], 1 }

</bundles_post_ra>
